<compile_context>
chip_gen: v7x
topology: tpu7x:2x2x1
jax: 0.10.0
libtpu: 0.0.40
codegen_flags: <defaults>
</compile_context>

<pallas_src>
import numpy as np
import jax
import jax.numpy as jnp
from jax.experimental import pallas as pl
from jax.experimental.pallas import tpu as pltpu

# ---------------- MFCC constants (torchaudio defaults + given melkwargs) ------
SAMPLE_RATE = 16000
N_MFCC = 40
N_FFT = 400
HOP = 160
N_MELS = 64
N_FREQS = N_FFT // 2 + 1          # 201 (onesided)
TOP_DB = 80.0                     # torchaudio MFCC uses AmplitudeToDB('power', 80)
AMIN = 1e-10
NUM_CLASSES = 12

# ---------------- padded (lane/sublane aligned) dimensions --------------------
NFFT_PAD = 512                    # 400 -> 512   (matmul K)
NFREQ_PAD = 256                   # 201 -> 256
NMEL_PAD = 128                    # 64  -> 128
NMFCC_PAD = 128                   # 40  -> 128
C_PAD = 128                       # 12  -> 128   (lane-dense logits store)


def _round_up(n, m):
    return ((n + m - 1) // m) * m


# ---------------- constant-matrix builders (plain numpy glue) ----------------
def hann_window(n):
    # torch.hann_window(n, periodic=True)
    i = np.arange(n)
    return (0.5 - 0.5 * np.cos(2.0 * np.pi * i / n)).astype(np.float64)


def dft_basis(n_fft, n_freqs, window):
    # real/imag DFT basis with the analysis window folded in.
    n = np.arange(n_fft)[:, None]
    k = np.arange(n_freqs)[None, :]
    ang = 2.0 * np.pi * n * k / n_fft
    cos_b = (np.cos(ang) * window[:, None]).astype(np.float32)   # (n_fft, n_freqs)
    sin_b = (np.sin(ang) * window[:, None]).astype(np.float32)
    return cos_b, sin_b


def mel_filterbank(n_freqs, n_mels, sample_rate, f_min=0.0, f_max=None):
    # torchaudio.functional.melscale_fbanks, mel_scale='htk', norm=None
    if f_max is None:
        f_max = sample_rate / 2.0
    all_freqs = np.linspace(0.0, sample_rate // 2, n_freqs)

    def hz_to_mel(f):
        return 2595.0 * np.log10(1.0 + f / 700.0)

    def mel_to_hz(m):
        return 700.0 * (10.0 ** (m / 2595.0) - 1.0)

    m_pts = np.linspace(hz_to_mel(f_min), hz_to_mel(f_max), n_mels + 2)
    f_pts = mel_to_hz(m_pts)
    f_diff = f_pts[1:] - f_pts[:-1]
    slopes = f_pts[None, :] - all_freqs[:, None]          # (n_freqs, n_mels+2)
    down = -slopes[:, :-2] / f_diff[:-1]
    up = slopes[:, 2:] / f_diff[1:]
    fb = np.maximum(0.0, np.minimum(down, up))
    return fb.astype(np.float32)                           # (n_freqs, n_mels)


def dct_matrix(n_mfcc, n_mels):
    # torchaudio.functional.create_dct(n_mfcc, n_mels, norm='ortho') -> (n_mels, n_mfcc)
    n = np.arange(n_mels)[None, :]
    k = np.arange(n_mfcc)[:, None]
    dct = np.cos(np.pi / n_mels * (n + 0.5) * k)           # (n_mfcc, n_mels)
    dct[0] *= 1.0 / np.sqrt(2.0)
    dct *= np.sqrt(2.0 / n_mels)
    return np.ascontiguousarray(dct.T).astype(np.float32)  # (n_mels, n_mfcc)


# ---------------- fused Pallas kernel (one batch item per grid step) ----------
def fused_mfcc_kws_kernel(frames_ref, basis_ref, melfb_ref, dct_ref,
                          w3p_ref, bias_ref, out_ref):
    # frames: (1, T_pad, NFFT_PAD)  zero padded frames for one batch item
    # basis : (NFFT_PAD, 2*NFREQ_PAD)  [cos | sin], window folded in, zero padded
    # melfb : (NFREQ_PAD, NMEL_PAD)   zero padded
    # dct   : (NMEL_PAD, NMFCC_PAD)   zero padded (padded mel rows are zero!)
    # w3p   : (T_pad, C_PAD, NMFCC_PAD)  permuted/padded head weight
    # bias  : (1, C_PAD)
    # out   : (1, 1, C_PAD)           padded logits for this batch item
    frames = frames_ref[0]                                             # (T_pad, NFFT_PAD)

    # --- STFT (single matmul for real+imag parts) -> power spectrogram ---
    spec = jnp.dot(frames, basis_ref[...], preferred_element_type=jnp.float32)
    re = spec[:, :NFREQ_PAD]
    im = spec[:, NFREQ_PAD:]
    power = re * re + im * im                                          # (T_pad, NFREQ_PAD)

    # --- mel spectrogram -> dB (per-item top_db clamp) ---
    mel = jnp.dot(power, melfb_ref[...], preferred_element_type=jnp.float32)
    db = 10.0 * jnp.log10(jnp.maximum(mel, AMIN))
    # Padded rows/cols are exactly -100 dB (= 10*log10(AMIN)), which can never
    # exceed the real-region max, so the full-block max == per-item max.
    db = jnp.maximum(db, jnp.max(db) - TOP_DB)

    # --- DCT -> MFCC (padded mel rows of dct are zero, so no leakage) ---
    mfcc = jnp.dot(db, dct_ref[...], preferred_element_type=jnp.float32)  # (T_pad, NMFCC_PAD)

    # --- Flatten + Linear head, accumulated in-kernel ---
    # logits[c] = sum_{t,m} mfcc[t, m] * w3p[t, c, m]
    prod = mfcc[:, None, :] * w3p_ref[...]                 # (T_pad, C_PAD, NMFCC_PAD)
    logits = prod.sum(axis=0).sum(axis=-1) + bias_ref[0]   # (C_PAD,)
    out_ref[0, 0, :] = logits


def pallas_mfcc_kws(frames, basis, melfb, dct, w3p, bias):
    B, t_pad, nfft_pad = frames.shape
    two_nfreq = basis.shape[1]
    nfreq_pad, nmel_pad = melfb.shape
    nmfcc_pad = dct.shape[1]
    c_pad = w3p.shape[1]

    return pl.pallas_call(
        fused_mfcc_kws_kernel,
        out_shape=jax.ShapeDtypeStruct((B, 1, c_pad), jnp.float32),
        grid=(B,),
        in_specs=[
            pl.BlockSpec((1, t_pad, nfft_pad), lambda b: (b, 0, 0)),   # per-item frames
            pl.BlockSpec((nfft_pad, two_nfreq), lambda b: (0, 0)),     # resident constants
            pl.BlockSpec((nfreq_pad, nmel_pad), lambda b: (0, 0)),
            pl.BlockSpec((nmel_pad, nmfcc_pad), lambda b: (0, 0)),
            pl.BlockSpec((t_pad, c_pad, nmfcc_pad), lambda b: (0, 0, 0)),
            pl.BlockSpec((1, c_pad), lambda b: (0, 0)),
        ],
        out_specs=pl.BlockSpec((1, 1, c_pad), lambda b: (b, 0, 0)),
        compiler_params=pltpu.CompilerParams(
            dimension_semantics=("parallel",),
            vmem_limit_bytes=32 * 1024 * 1024,
        ),
    )(frames, basis, melfb, dct, w3p, bias)


# ---------------- forward pass -------------------------------------------------
def num_frames(n_samples):
    # torch.stft with center=True: reflect-pad n_fft//2 on both sides.
    padded = n_samples + 2 * (N_FFT // 2)
    return 1 + (padded - N_FFT) // HOP


def mfcc_kws_forward(x, params):
    """x: (B, num_samples) float32 -> logits (B, NUM_CLASSES)."""
    B, L = x.shape
    T = num_frames(L)
    t_pad = _round_up(T, 8)

    pad = N_FFT // 2
    xp = jnp.pad(x, ((0, 0), (pad, pad)), mode="reflect")
    # TODO(synk): move framing into the kernel (pl.ds windows) for large inputs.
    idx = np.arange(T)[:, None] * HOP + np.arange(N_FFT)[None, :]   # (T, n_fft)
    frames = xp[:, idx]                                             # (B, T, n_fft)
    frames = jnp.pad(frames, ((0, 0), (0, t_pad - T), (0, NFFT_PAD - N_FFT)))

    logits_pad = pallas_mfcc_kws(frames, params["basis"], params["melfb"],
                                 params["dct"], params["w3p"], params["bias"])
    return logits_pad[:, 0, :NUM_CLASSES]


def build_params(n_samples, key):
    T = num_frames(n_samples)
    t_pad = _round_up(T, 8)

    # combined [cos | sin] basis, window folded in, zero padded to (512, 512)
    win = hann_window(N_FFT)
    cos_b, sin_b = dft_basis(N_FFT, N_FREQS, win)
    basis = np.zeros((NFFT_PAD, 2 * NFREQ_PAD), np.float32)
    basis[:N_FFT, :N_FREQS] = cos_b
    basis[:N_FFT, NFREQ_PAD:NFREQ_PAD + N_FREQS] = sin_b

    melfb = np.zeros((NFREQ_PAD, NMEL_PAD), np.float32)
    melfb[:N_FREQS, :N_MELS] = mel_filterbank(N_FREQS, N_MELS, SAMPLE_RATE)

    dct = np.zeros((NMEL_PAD, NMFCC_PAD), np.float32)
    dct[:N_MELS, :N_MFCC] = dct_matrix(N_MFCC, N_MELS)   # padded mel rows stay zero

    # Stand-in classifier head: Flatten + Linear(n_mfcc*T, NUM_CLASSES).
    kw, kb = jax.random.split(key)
    feat_dim = N_MFCC * T
    bound = 1.0 / np.sqrt(feat_dim)
    w = jax.random.uniform(kw, (feat_dim, NUM_CLASSES), jnp.float32, -bound, bound)
    b = jax.random.uniform(kb, (NUM_CLASSES,), jnp.float32, -bound, bound)

    # PyTorch flatten of (B, n_mfcc, T) gives feature index m*T + t, so permute
    # the weight offline into (t, c, m) layout (+ zero padding) so the kernel
    # needs no transpose/reshape:  w3p[t, c, m] = W[m*T + t, c].
    w_np = np.asarray(w).reshape(N_MFCC, T, NUM_CLASSES)         # [m, t, c]
    w3p = np.zeros((t_pad, C_PAD, NMFCC_PAD), np.float32)
    w3p[:T, :NUM_CLASSES, :N_MFCC] = np.transpose(w_np, (1, 2, 0))

    bias = np.zeros((1, C_PAD), np.float32)
    bias[0, :NUM_CLASSES] = np.asarray(b)

    return {
        "basis": jnp.asarray(basis),
        "melfb": jnp.asarray(melfb),
        "dct": jnp.asarray(dct),
        "w3p": jnp.asarray(w3p),
        "bias": jnp.asarray(bias),
    }


if __name__ == "__main__":
    B = 2
    L = 1600                      # 0.1 s of 16 kHz audio -> T = 11 frames
    key = jax.random.PRNGKey(0)
    k_audio, k_params = jax.random.split(key)

    x = jax.random.normal(k_audio, (B, L), dtype=jnp.float32)
    params = build_params(L, k_params)

    fwd = jax.jit(mfcc_kws_forward)
    logits = fwd(x, params)
    jax.block_until_ready(logits)

    assert logits.shape == (B, NUM_CLASSES)
    assert bool(jnp.all(jnp.isfinite(logits)))
    print("KERNEL_OK")
</pallas_src>

<mosaic_0001>
module attributes {stable_mosaic.version = 11 : i64} {
  func.func @fused_mfcc_kws_kernel(%arg0: i32, %arg1: memref<1x16x512xf32, #tpu.memory_space<vmem>>, %arg2: memref<512x512xf32, #tpu.memory_space<vmem>>, %arg3: memref<256x128xf32, #tpu.memory_space<vmem>>, %arg4: memref<128x128xf32, #tpu.memory_space<vmem>>, %arg5: memref<16x128x128xf32, #tpu.memory_space<vmem>>, %arg6: memref<1x128xf32, #tpu.memory_space<vmem>>, %arg7: memref<1x1x128xf32, #tpu.memory_space<vmem>>) attributes {dimension_semantics = [#tpu.dimension_semantics<parallel>], iteration_bounds = array<i64: 2>, scalar_prefetch = 0 : i64, scratch_operands = 0 : i64, tpu.core_type = #tpu.core_type<tc>, window_params = [{transform_indices = @transform_0, window_bounds = array<i64: 1, 16, 512>}, {pipeline_mode = #tpu.pipeline_mode<synchronous>, transform_indices = @transform_1, window_bounds = array<i64: 512, 512>}, {pipeline_mode = #tpu.pipeline_mode<synchronous>, transform_indices = @transform_2, window_bounds = array<i64: 256, 128>}, {pipeline_mode = #tpu.pipeline_mode<synchronous>, transform_indices = @transform_3, window_bounds = array<i64: 128, 128>}, {pipeline_mode = #tpu.pipeline_mode<synchronous>, transform_indices = @transform_4, window_bounds = array<i64: 16, 128, 128>}, {pipeline_mode = #tpu.pipeline_mode<synchronous>, transform_indices = @transform_5, window_bounds = array<i64: 1, 128>}, {transform_indices = @transform_6, window_bounds = array<i64: 1, 1, 128>}]} {
    %c0 = arith.constant 0 : index
    %c0_0 = arith.constant 0 : index
    %c0_1 = arith.constant 0 : index
    %0 = vector.load %arg1[%c0, %c0_0, %c0_1] : memref<1x16x512xf32, #tpu.memory_space<vmem>>, vector<1x16x512xf32>
    %1 = vector.shape_cast %0 : vector<1x16x512xf32> to vector<16x512xf32>
    %c0_2 = arith.constant 0 : index
    %c0_3 = arith.constant 0 : index
    %2 = vector.load %arg2[%c0_2, %c0_3] : memref<512x512xf32, #tpu.memory_space<vmem>>, vector<512x512xf32>
    %cst = arith.constant dense<0.000000e+00> : vector<16x512xf32>
    %3 = tpu.matmul %1, %2, %cst {dimension_numbers = #tpu.dot_dimension_numbers<[1], [0], [0], [1], [0, 0, 1, 1], [], []>} : vector<16x512xf32>, vector<512x512xf32>, vector<16x512xf32> -> vector<16x512xf32>
    %4 = vector.extract_strided_slice %3 {offsets = [0, 0], sizes = [16, 256], strides = [1, 1]} : vector<16x512xf32> to vector<16x256xf32>
    %5 = vector.extract_strided_slice %3 {offsets = [0, 256], sizes = [16, 256], strides = [1, 1]} : vector<16x512xf32> to vector<16x256xf32>
    %6 = arith.mulf %4, %4 : vector<16x256xf32>
    %7 = arith.mulf %5, %5 : vector<16x256xf32>
    %8 = arith.addf %6, %7 : vector<16x256xf32>
    %c0_4 = arith.constant 0 : index
    %c0_5 = arith.constant 0 : index
    %9 = vector.load %arg3[%c0_4, %c0_5] : memref<256x128xf32, #tpu.memory_space<vmem>>, vector<256x128xf32>
    %cst_6 = arith.constant dense<0.000000e+00> : vector<16x128xf32>
    %10 = tpu.matmul %8, %9, %cst_6 {dimension_numbers = #tpu.dot_dimension_numbers<[1], [0], [0], [1], [0, 0, 1, 1], [], []>} : vector<16x256xf32>, vector<256x128xf32>, vector<16x128xf32> -> vector<16x128xf32>
    %cst_7 = arith.constant 1.000000e-10 : f32
    %11 = vector.broadcast %cst_7 : f32 to vector<16x128xf32>
    %12 = arith.maximumf %10, %11 : vector<16x128xf32>
    %13 = math.log %12 : vector<16x128xf32>
    %cst_8 = arith.constant 0.434294492 : f32
    %14 = vector.broadcast %cst_8 : f32 to vector<16x128xf32>
    %15 = arith.mulf %13, %14 : vector<16x128xf32>
    %cst_9 = arith.constant 1.000000e+01 : f32
    %16 = vector.broadcast %cst_9 : f32 to vector<16x128xf32>
    %17 = arith.mulf %16, %15 : vector<16x128xf32>
    %18 = vector.shape_cast %17 : vector<16x128xf32> to vector<1x16x128xf32>
    %cst_10 = arith.constant dense<0xFF800000> : vector<1xf32>
    %19 = vector.multi_reduction <maximumf>, %18, %cst_10 [1, 2] : vector<1x16x128xf32> to vector<1xf32>
    %20 = vector.shape_cast %19 : vector<1xf32> to vector<1x1x1xf32>
    %21 = vector.extract %20[0, 0, 0] : f32 from vector<1x1x1xf32>
    %cst_11 = arith.constant 8.000000e+01 : f32
    %22 = arith.subf %21, %cst_11 : f32
    %23 = vector.broadcast %22 : f32 to vector<16x128xf32>
    %24 = arith.maximumf %17, %23 : vector<16x128xf32>
    %c0_12 = arith.constant 0 : index
    %c0_13 = arith.constant 0 : index
    %25 = vector.load %arg4[%c0_12, %c0_13] : memref<128x128xf32, #tpu.memory_space<vmem>>, vector<128x128xf32>
    %cst_14 = arith.constant dense<0.000000e+00> : vector<16x128xf32>
    %26 = tpu.matmul %24, %25, %cst_14 {dimension_numbers = #tpu.dot_dimension_numbers<[1], [0], [0], [1], [0, 0, 1, 1], [], []>} : vector<16x128xf32>, vector<128x128xf32>, vector<16x128xf32> -> vector<16x128xf32>
    %27 = vector.shape_cast %26 : vector<16x128xf32> to vector<16x1x128xf32>
    %c0_15 = arith.constant 0 : index
    %c0_16 = arith.constant 0 : index
    %c0_17 = arith.constant 0 : index
    %28 = vector.load %arg5[%c0_15, %c0_16, %c0_17] : memref<16x128x128xf32, #tpu.memory_space<vmem>>, vector<16x128x128xf32>
    %29 = vector.broadcast %27 : vector<16x1x128xf32> to vector<16x128x128xf32>
    %30 = arith.mulf %29, %28 : vector<16x128x128xf32>
    %cst_18 = arith.constant dense<0.000000e+00> : vector<128x128xf32>
    %31 = vector.multi_reduction <add>, %30, %cst_18 [0] : vector<16x128x128xf32> to vector<128x128xf32>
    %cst_19 = arith.constant dense<0.000000e+00> : vector<128xf32>
    %32 = vector.multi_reduction <add>, %31, %cst_19 [1] : vector<128x128xf32> to vector<128xf32>
    %c0_20 = arith.constant 0 : index
    %c0_21 = arith.constant 0 : index
    %33 = vector.load %arg6[%c0_20, %c0_21] : memref<1x128xf32, #tpu.memory_space<vmem>>, vector<1x128xf32>
    %34 = vector.shape_cast %33 : vector<1x128xf32> to vector<128xf32>
    %35 = arith.addf %32, %34 : vector<128xf32>
    %c0_22 = arith.constant 0 : index
    %c0_23 = arith.constant 0 : index
    %c0_24 = arith.constant 0 : index
    %36 = vector.load %arg7[%c0_22, %c0_23, %c0_24] : memref<1x1x128xf32, #tpu.memory_space<vmem>>, vector<1x1x128xf32>
    %37 = vector.shape_cast %36 : vector<1x1x128xf32> to vector<128xf32>
    %38 = vector.shape_cast %35 : vector<128xf32> to vector<1x1x128xf32>
    tpu.vector_store %arg7[%c0_22, %c0_23, %c0_24], %38 {strides = array<i32>} : memref<1x1x128xf32, #tpu.memory_space<vmem>>, vector<1x1x128xf32>,
    return
  }
  func.func @transform_0(%arg0: i32) -> (i32, i32, i32) {
    %c0_i32 = arith.constant 0 : i32
    %c0_i32_0 = arith.constant 0 : i32
    %c0_i32_1 = arith.constant 0 : i32
    return %arg0, %c0_i32, %c0_i32_0 : i32, i32, i32
  }
  func.func @transform_1(%arg0: i32) -> (i32, i32) {
    %c0_i32 = arith.constant 0 : i32
    %c0_i32_0 = arith.constant 0 : i32
    %c0_i32_1 = arith.constant 0 : i32
    return %c0_i32, %c0_i32_0 : i32, i32
  }
  func.func @transform_2(%arg0: i32) -> (i32, i32) {
    %c0_i32 = arith.constant 0 : i32
    %c0_i32_0 = arith.constant 0 : i32
    %c0_i32_1 = arith.constant 0 : i32
    return %c0_i32, %c0_i32_0 : i32, i32
  }
  func.func @transform_3(%arg0: i32) -> (i32, i32) {
    %c0_i32 = arith.constant 0 : i32
    %c0_i32_0 = arith.constant 0 : i32
    %c0_i32_1 = arith.constant 0 : i32
    return %c0_i32, %c0_i32_0 : i32, i32
  }
  func.func @transform_4(%arg0: i32) -> (i32, i32, i32) {
    %c0_i32 = arith.constant 0 : i32
    %c0_i32_0 = arith.constant 0 : i32
    %c0_i32_1 = arith.constant 0 : i32
    %c0_i32_2 = arith.constant 0 : i32
    return %c0_i32, %c0_i32_0, %c0_i32_1 : i32, i32, i32
  }
  func.func @transform_5(%arg0: i32) -> (i32, i32) {
    %c0_i32 = arith.constant 0 : i32
    %c0_i32_0 = arith.constant 0 : i32
    %c0_i32_1 = arith.constant 0 : i32
    return %c0_i32, %c0_i32_0 : i32, i32
  }
  func.func @transform_6(%arg0: i32) -> (i32, i32, i32) {
    %c0_i32 = arith.constant 0 : i32
    %c0_i32_0 = arith.constant 0 : i32
    %c0_i32_1 = arith.constant 0 : i32
    return %arg0, %c0_i32, %c0_i32_0 : i32, i32, i32
  }
}

</mosaic_0001>

<bundles_post_ra>
// kernel: reverse.1
= control target key start
LH: loop header
LB: loop body
LE: loop exit
PB: predicated region body
PF: predicated region fallthrough
CT: control target
= control target key end

     0   :  { %v2_v0 = vlaneseq  ;;  %s311_s0 = inlined_call_operand.vmem [shape: f32[2,256], index: 0, kind: input, shape index: {}]   ;;  %s312_s1 = inlined_call_operand.vmem [shape: f32[2,256], index: 1, kind: output, shape index: {}]  }
   0x2   :  { %v3_v1 = vsub.s32 127, %v2_v0 }
   0x4   :  { %4 = vset.pattern.permute.xlu0 %v3_v1 }
   0x5   :  { %s271_s6 = smov 0   ;;  %s273_s7 = smov 0  }
   0x6   :  { %s275_s8 = smov 0  }
   0x7 LB: > { %s201_s9 = sadd.s32 4294967295, %s259_s8   ;;  %s19_s10 = sadd.s32 1, %s255_s7  ;;  %s259_s8 = sphi %s275_s8, %s10_s8   ;;  %s255_s7 = sphi %s273_s7, %s314_s7   ;;  %s251_s6 = sphi %s271_s6, %s313_s6  }
   0x8   : > { %p20_p0 = scmp.ge.s32.totalorder %s19_s10, 2  ;;  %p203_p1 = scmp.ge.s32.totalorder %s259_s8, 2 }
   0x9   : > { %s38_s11 = sand.u32 (!%p203_p1), 1, %s259_s8   ;;  %s41_s12 = ssub.s32 (!%p203_p1), 1, %s255_s7 }
   0xa   : > { %s316_s10 = smov (%p20_p0, %s19_s10), 0  ;;  %36 = sbr.rel (%p203_p1) target bundleno = 17 (0x11), region = 16 }
   0xb   : > { %s204_s13 = sshll.u32 (!%p203_p1), %s38_s11, 1  ;;  %s205_s14 = sshll.u32 (!%p203_p1), %s41_s12, 1 }
   0xc   : > { %s45_s17 = scalar_lea.vmem (!%p203_p1), %s311_s0, %s205_s14  ;;  %s40_s18 = scalar_lea.vmem (!%p203_p1), [#allocation1], %s204_s13 }
   0xd   : > { %v61_v2 = vld [vmem:[%s45_s17] sm:$0x3] (!%p203_p1) }
   0xe   : > { %62 = vst [vmem:[%s40_s18] sm:$0x3] (!%p203_p1), %v61_v2 }
  0x11 PF: > { %p206_p2 = scmp.ge.s32.totalorder %s259_s8, 1  ;;  %p78_p3 = scmp.lt.s32.totalorder %s259_s8, 3 }
  0x13   : > { %p79_p4 = pnand %p206_p2, %p78_p3 }
  0x14   : > { %s89_s19 = sand.u32 (!%p79_p4), 1, %s201_s9   ;;  %s210_s23 = sshll.u32 (!%p79_p4), %s251_s6, 1 }
  0x15   : > { %82 = sbr.rel (%p79_p4) target bundleno = 177 (0xb1), region = 50  ;;  %s207_s20 = sshll.u32 (!%p79_p4), %s89_s19, 1 }
  0x16   : > { %s91_s21 = scalar_lea.vmem (!%p79_p4), [#allocation1], %s207_s20  ;;  %s95_s22 = scalar_lea.vmem (!%p79_p4), [#allocation3], %s207_s20 }
  0x17   : > { %v98_v3 = vld [vmem:[%s91_s21] sm:$0x3] (!%p79_p4)  ;;  %s118_s26 = scalar_lea.vmem (!%p79_p4), %s312_s1, %s210_s23 }
  0x18   : > { %99 = vst [vmem:[#allocation0] sm:$0x3] (!%p79_p4), %v98_v3 }
  0x1f   : > { %v101_v4 = vld [vmem:[#allocation0] sm:$0xff] }
  0x20   : > { %102 = vperm.xlu0 %4, %v101_v4  }
  0x9f   : > { %v103_v5 = vpop.permute.xlu0 %102 }
  0xa0   : > { %104 = vst [vmem:[#allocation2] sm:$0xff] %v103_v5 }
  0xa7   : > { %v108_v6 = vld [vmem:[#allocation2] sm:$0x3] }
  0xa8   : > { %110 = vst [vmem:[%s95_s22] sm:$0x3] %v108_v6 }
  0xaf   : > { %v134_v7 = vld [vmem:[%s95_s22] sm:$0x3] }
  0xb0   : > { %135 = vst [vmem:[%s118_s26] sm:$0x3] %v134_v7 }
  0xb1 PF: > { %s10_s8 = sadd.s32 1, %s259_s8   ;;  %s313_s6 = smov %s255_s7 }
  0xb2   : > { %p7_p5 = scmp.ge.s32.totalorder %s10_s8, 4   ;;  %s314_s7 = smov %s316_s10 }
  0xb4   :  { %9 = sbr.rel (!%p7_p5) target bundleno = 7 (0x7), region = 110 }

// kernel: mfcc_kws_forward.1
= control target key start
LH: loop header
LB: loop body
LE: loop exit
PB: predicated region body
PF: predicated region fallthrough
CT: control target
= control target key end

     0   :  { %11 = vsyncpa [#allocation3], 0  ;;  %s5109_s0 = inlined_call_operand.vmem [shape: f32[2,16,512], index: 0, kind: input, shape index: {}]   ;;  %s5110_s1 = inlined_call_operand.vmem [shape: f32[512,512], index: 1, kind: input, shape index: {}]   ;;  %s5111_s2 = inlined_call_operand.vmem [shape: f32[256,128], index: 2, kind: input, shape index: {}]   ;;  %s5112_s3 = inlined_call_operand.vmem [shape: f32[128,128], index: 3, kind: input, shape index: {}]   ;;  %s5113_s4 = inlined_call_operand.vmem [shape: f32[16,128,128], index: 4, kind: input, shape index: {}]   ;;  %s5114_s5 = inlined_call_operand.vmem [shape: f32[1,128], index: 5, kind: input, shape index: {}]   ;;  %s5115_s6 = inlined_call_operand.hbm [shape: f32[2,1,128], index: 6, kind: output, shape index: {}]  }
   0x1   :  { %13 = vsyncpa [#allocation3 + $0x1], 0  ;;  %s2948_s21 = smov 0   ;;  %s2950_s22 = smov 0  }
   0x2   :  { %s2952_s23 = smov 0   ;;  %s2954_s24 = smov 0  }
   0x3 LB: > { %s2969_s25 = sadd.s32 4294967295, %s2908_s24   ;;  %s2365_s26 = sadd.s32 4294967294, %s2908_s24   ;;  %s2908_s24 = sphi %s2954_s24, %s5121_s24   ;;  %s2904_s23 = sphi %s2952_s23, %s5120_s23   ;;  %s2900_s22 = sphi %s2950_s22, %s5119_s22   ;;  %s2896_s21 = sphi %s2948_s21, %s5118_s21  }
   0x4   : > { %s2973_s27 = sadd.s32 1, %s2908_s24   ;;  %s157_s28 = sadd.s32 1, %s2904_s23 }
   0x5   : > { %s154_s29 = ssub.s32 %s2908_s24, %s2973_s27  ;;  %p167_p0 = scmp.ne.s32.totalorder %s2904_s23, %s2900_s22 }
   0x6   : > { %p155_p1 = scmp.eq.s32.totalorder %s154_s29, 0  ;;  %p168_p2 = scmp.eq.s32.totalorder %s2969_s25, 1 }
   0x7   : > { %p173_p3 = scmp.ne.s32.totalorder %s2900_s22, %s2896_s21  ;;  %p174_p4 = scmp.eq.s32.totalorder %s2365_s26, 1 }
   0x8   : > { %s2984_s30 = scalar_select %p155_p1, %s2904_s23, %s157_s28  }
   0x9   : > { %p2986_p5 = por %p168_p2, %p167_p0  ;;  %p2990_p6 = por %p174_p4, %p173_p3 }
   0xa   : > { %p2368_p7 = scmp.ge.s32.totalorder %s2908_s24, 1  ;;  %p215_p8 = scmp.lt.s32.totalorder %s2908_s24, 3 }
   0xc   : > { %p216_p9 = pnand %p2368_p7, %p215_p8 }
   0xd   : > { %v258_v0 = vld [vmem:[%s5110_s1 + $0x8] sm:$0xff] (!%p216_p9)  ;;  %v260_v2 = vld [vmem:[%s5110_s1 + $0x18] sm:$0xff] (!%p216_p9)  ;;  %v257_v5 = vld [vmem:[%s5110_s1] sm:$0xff] (!%p216_p9)  ;;  %p244_p10 = scmp.lt.s32.totalorder (!%p216_p9), %s2969_s25, 1  ;;  %vm2195_vm0 = vcmask (!%p216_p9), 130112   ;;  %vm2202_vm1 = vcmask (!%p216_p9), 195712  }
   0xe   : > { %219 = sbr.rel (%p216_p9) target bundleno = 1469 (0x5bd), region = 44  ;;  %v262_v1 = vld [vmem:[%s5110_s1 + $0x28] sm:$0xff] (!%p216_p9)  ;;  %v264_v4 = vld [vmem:[%s5110_s1 + $0x38] sm:$0xff] (!%p216_p9)  ;;  %v261_v6 = vld [vmem:[%s5110_s1 + $0x20] sm:$0xff] (!%p216_p9)  ;;  %vm2209_vm2 = vcmask (!%p216_p9), 261312   ;;  %vm2216_vm3 = vcmask (!%p216_p9), 326912  }
   0xf   : > { %v2468_v3 = vpack.c.bf16 (!%p216_p9), %v262_v1, %v258_v0  ;;  %v2596_v7 = vpack.c.bf16 (!%p216_p9), %v264_v4, %v260_v2  ;;  %v2470_v8 = vpack.c.bf16 (!%p216_p9), %v261_v6, %v257_v5  ;;  %v259_v9 = vld [vmem:[%s5110_s1 + $0x10] sm:$0xff] (!%p216_p9)  ;;  %v266_v11 = vld [vmem:[%s5110_s1 + $0x48] sm:$0xff] (!%p216_p9)  ;;  %v268_v14 = vld [vmem:[%s5110_s1 + $0x58] sm:$0xff] (!%p216_p9)  ;;  %vm2223_vm4 = vcmask (!%p216_p9), 392512   ;;  %s2373_s10 = sshll.u32 (!%p216_p9), %s2969_s25, 4  ;;  %s2912_s20 = smov (!%p216_p9), [#allocation2]  }
  0x10   : > { %v263_v10 = vld [vmem:[%s5110_s1 + $0x30] sm:$0xff] (!%p216_p9)  ;;  %v270_v13 = vld [vmem:[%s5110_s1 + $0x68] sm:$0xff] (!%p216_p9)  ;;  %v272_v15 = vld [vmem:[%s5110_s1 + $0x78] sm:$0xff] (!%p216_p9)  ;;  %vm2230_vm5 = vcmask (!%p216_p9), 458112   ;;  %vm2237_vm6 = vcmask (!%p216_p9), 523712   ;;  %vm2244_vm7 = vcmask (!%p216_p9), 589312   ;;  %s5067_s17 = scalar_lea.hbm (!%p216_p9), %s5115_s6, %s2373_s10 }
  0x11   : > { %2469 = vmatprep.subr.bf16.mxu0 (!%p216_p9), %v2468_v3  ;;  %v2598_v12 = vpack.c.bf16 (!%p216_p9), %v263_v10, %v259_v9  ;;  %2597 = vmatprep.subr.bf16.mxu1 (!%p216_p9), %v2596_v7  ;;  %v2472_v16 = vpack.c.bf16 (!%p216_p9), %v270_v13, %v266_v11  ;;  %v2600_v17 = vpack.c.bf16 (!%p216_p9), %v272_v15, %v268_v14  ;;  %v265_v18 = vld [vmem:[%s5110_s1 + $0x40] sm:$0xff] (!%p216_p9)  ;;  %v267_v20 = vld [vmem:[%s5110_s1 + $0x50] sm:$0xff] (!%p216_p9)  ;;  %v274_v23 = vld [vmem:[%s5110_s1 + $0x88] sm:$0xff] (!%p216_p9)  ;;  %vm2251_vm8 = vcmask (!%p216_p9), 654912  }
  0x12   : > { %2471 = vmatpush1.bf16.msra.mxu0 (!%p216_p9), %v2470_v8  ;;  %v269_v19 = vld [vmem:[%s5110_s1 + $0x60] sm:$0xff] (!%p216_p9)  ;;  %v271_v22 = vld [vmem:[%s5110_s1 + $0x70] sm:$0xff] (!%p216_p9)  ;;  %v278_v24 = vld [vmem:[%s5110_s1 + $0xa8] sm:$0xff] (!%p216_p9)  ;;  %vm2258_vm9 = vcmask (!%p216_p9), 720512   ;;  %vm2265_vm10 = vcmask (!%p216_p9), 786112   ;;  %vm2272_vm11 = vcmask (!%p216_p9), 851712  }
  0x13   : > { %2599 = vmatpush1.bf16.msra.mxu1 (!%p216_p9), %v2598_v12  ;;  %v2474_v21 = vpack.c.bf16 (!%p216_p9), %v269_v19, %v265_v18  ;;  %2473 = vmatprep.subr.bf16.mxu0 (!%p216_p9), %v2472_v16  ;;  %v2602_v25 = vpack.c.bf16 (!%p216_p9), %v271_v22, %v267_v20  ;;  %v2476_v26 = vpack.c.bf16 (!%p216_p9), %v278_v24, %v274_v23  ;;  %v276_v27 = vld [vmem:[%s5110_s1 + $0x98] sm:$0xff] (!%p216_p9)  ;;  %v273_v29 = vld [vmem:[%s5110_s1 + $0x80] sm:$0xff] (!%p216_p9)  ;;  %v275_v32 = vld [vmem:[%s5110_s1 + $0x90] sm:$0xff] (!%p216_p9)  ;;  %vm2279_vm12 = vcmask (!%p216_p9), 917312  }
  0x14   : > { %2601 = vmatprep.subr.bf16.mxu1 (!%p216_p9), %v2600_v17  ;;  %v280_v28 = vld [vmem:[%s5110_s1 + $0xb8] sm:$0xff] (!%p216_p9)  ;;  %v277_v31 = vld [vmem:[%s5110_s1 + $0xa0] sm:$0xff] (!%p216_p9)  ;;  %v279_v33 = vld [vmem:[%s5110_s1 + $0xb0] sm:$0xff] (!%p216_p9)  ;;  %vm2286_vm13 = vcmask (!%p216_p9), 982912   ;;  %vm2293_vm14 = vcmask (!%p216_p9), 1048512  }
  0x15   : > { %v2604_v30 = vpack.c.bf16 %v280_v28, %v276_v27  ;;  %v2478_v34 = vpack.c.bf16 %v277_v31, %v273_v29  ;;  %v282_v35 = vld [vmem:[%s5110_s1 + $0xc8] sm:$0xff]  ;;  %v284_v37 = vld [vmem:[%s5110_s1 + $0xd8] sm:$0xff]  ;;  %v2606_v38 = vpack.c.bf16 %v279_v33, %v275_v32  ;;  %v281_v41 = vld [vmem:[%s5110_s1 + $0xc0] sm:$0xff]  ;;  %s3228_s11 = scalar_select %p244_p10, %s2969_s25, 1 }
  0x16   : > { %2475 = vmatpush1.bf16.msra.mxu0 %v2474_v21  ;;  %v286_v36 = vld [vmem:[%s5110_s1 + $0xe8] sm:$0xff]  ;;  %v288_v40 = vld [vmem:[%s5110_s1 + $0xf8] sm:$0xff]  ;;  %v285_v42 = vld [vmem:[%s5110_s1 + $0xe0] sm:$0xff] }
  0x17   : > { %2603 = vmatpush1.bf16.msra.mxu1 %v2602_v25  ;;  %2477 = vmatprep.subr.bf16.mxu0 %v2476_v26  ;;  %v2480_v39 = vpack.c.bf16 %v286_v36, %v282_v35  ;;  %v2608_v43 = vpack.c.bf16 %v288_v40, %v284_v37  ;;  %v283_v44 = vld [vmem:[%s5110_s1 + $0xd0] sm:$0xff]  ;;  %v290_v46 = vld [vmem:[%s5110_s1 + $0x108] sm:$0xff]  ;;  %v292_v48 = vld [vmem:[%s5110_s1 + $0x118] sm:$0xff]  ;;  %v2482_v50 = vpack.c.bf16 %v285_v42, %v281_v41  ;;  %s2376_s14 = sshll.u32 %s3228_s11, 6 }
  0x18   : > { %2605 = vmatprep.subr.bf16.mxu1 %v2604_v30  ;;  %v287_v45 = vld [vmem:[%s5110_s1 + $0xf0] sm:$0xff]  ;;  %v294_v47 = vld [vmem:[%s5110_s1 + $0x128] sm:$0xff]  ;;  %v296_v49 = vld [vmem:[%s5110_s1 + $0x138] sm:$0xff]  ;;  %s3282_s19 = scalar_lea.vmem %s5109_s0, %s2376_s14  ;;  %s242_s14 = sand.u32 1, %s2900_s22  }
  0x19   : > { %v2610_v51 = vpack.c.bf16 %v287_v45, %v283_v44  ;;  %v2484_v52 = vpack.c.bf16 %v294_v47, %v290_v46  ;;  %v289_v53 = vld [vmem:[%s5110_s1 + $0x100] sm:$0xff]  ;;  %v291_v55 = vld [vmem:[%s5110_s1 + $0x110] sm:$0xff]  ;;  %v2612_v56 = vpack.c.bf16 %v296_v49, %v292_v48  ;;  %v298_v58 = vld [vmem:[%s5110_s1 + $0x148] sm:$0xff]  ;;  %s243_s12 = scalar_lea.vmem [#allocation2], %s242_s14  ;;  %s2298_s18 = scalar_lea.sflag [#allocation3], %s242_s14 }
  0x1a   : > { %2479 = vmatpush1.bf16.msra.mxu0 %v2478_v34  ;;  %v293_v54 = vld [vmem:[%s5110_s1 + $0x120] sm:$0xff]  ;;  %v295_v57 = vld [vmem:[%s5110_s1 + $0x130] sm:$0xff]  ;;  %v302_v59 = vld [vmem:[%s5110_s1 + $0x168] sm:$0xff]  ;;  %s2310_s13 = sshll.u32 %s243_s12, 4  ;;  %s5069_s13 = int_to_ptr.vmem [resolvable:$true] %s2310_s13 }
  0x1b   : > { %2607 = vmatpush1.bf16.msra.mxu1 %v2606_v38  ;;  %2481 = vmatprep.subr.bf16.mxu0 %v2480_v39  ;;  %v300_v60 = vld [vmem:[%s5110_s1 + $0x158] sm:$0xff]  ;;  %v2486_v62 = vpack.c.bf16 %v293_v54, %v289_v53  ;;  %v2614_v63 = vpack.c.bf16 %v295_v57, %v291_v55  ;;  %v2488_v0 = vpack.c.bf16 %v302_v59, %v298_v58  ;;  %v297_v1 = vld [vmem:[%s5110_s1 + $0x140] sm:$0xff]  ;;  %v299_v3 = vld [vmem:[%s5110_s1 + $0x150] sm:$0xff]  ;;  %s2846_s25 = scalar_lea.vmem %s5069_s13, 16 }
  0x1c   : > { %2609 = vmatprep.subr.bf16.mxu1 %v2608_v43  ;;  %v304_v61 = vld [vmem:[%s5110_s1 + $0x178] sm:$0xff]  ;;  %v301_v2 = vld [vmem:[%s5110_s1 + $0x160] sm:$0xff]  ;;  %v303_v5 = vld [vmem:[%s5110_s1 + $0x170] sm:$0xff]  ;;  %p2847_p11 = scmp.ne.s32.totalorder %s5069_s13, %s2846_s25 }
  0x1d   : > { %v2616_v4 = vpack.c.bf16 %v304_v61, %v300_v60  ;;  %v306_v6 = vld [vmem:[%s5110_s1 + $0x188] sm:$0xff]  ;;  %v308_v8 = vld [vmem:[%s5110_s1 + $0x198] sm:$0xff]  ;;  %v2490_v10 = vpack.c.bf16 %v301_v2, %v297_v1  ;;  %v2618_v11 = vpack.c.bf16 %v303_v5, %v299_v3  ;;  %v305_v13 = vld [vmem:[%s5110_s1 + $0x180] sm:$0xff] }
  0x1e   : > { %2483 = vmatpush1.bf16.msra.mxu0 %v2482_v50  ;;  %v310_v7 = vld [vmem:[%s5110_s1 + $0x1a8] sm:$0xff]  ;;  %v312_v9 = vld [vmem:[%s5110_s1 + $0x1b8] sm:$0xff]  ;;  %v309_v14 = vld [vmem:[%s5110_s1 + $0x1a0] sm:$0xff]  ;;  %p2848_p12 = pnand %p2847_p11, %p2986_p5 }
  0x1f   : > { %2611 = vmatpush1.bf16.msra.mxu1 %v2610_v51  ;;  %2485 = vmatprep.subr.bf16.mxu0 %v2484_v52  ;;  %v2492_v12 = vpack.c.bf16 %v310_v7, %v306_v6  ;;  %v307_v15 = vld [vmem:[%s5110_s1 + $0x190] sm:$0xff]  ;;  %v2620_v16 = vpack.c.bf16 %v312_v9, %v308_v8  ;;  %v314_v18 = vld [vmem:[%s5110_s1 + $0x1c8] sm:$0xff]  ;;  %v316_v20 = vld [vmem:[%s5110_s1 + $0x1d8] sm:$0xff]  ;;  %v2494_v22 = vpack.c.bf16 %v309_v14, %v305_v13 }
  0x20   : > { %2613 = vmatprep.subr.bf16.mxu1 %v2612_v56  ;;  %v311_v17 = vld [vmem:[%s5110_s1 + $0x1b0] sm:$0xff]  ;;  %v318_v19 = vld [vmem:[%s5110_s1 + $0x1e8] sm:$0xff]  ;;  %v320_v21 = vld [vmem:[%s5110_s1 + $0x1f8] sm:$0xff]  ;;  %p2849_p13 = pneg %p2848_p12 }
  0x21   : > { %v2622_v23 = vpack.c.bf16 %v311_v17, %v307_v15  ;;  %v2496_v24 = vpack.c.bf16 %v318_v19, %v314_v18  ;;  %v313_v25 = vld [vmem:[%s5110_s1 + $0x1c0] sm:$0xff]  ;;  %v315_v27 = vld [vmem:[%s5110_s1 + $0x1d0] sm:$0xff]  ;;  %v2624_v28 = vpack.c.bf16 %v320_v21, %v316_v20  ;;  %v322_v30 = vld [vmem:[%s5110_s1 + $0x208] sm:$0xff] }
  0x22   : > { %2487 = vmatpush1.bf16.msra.mxu0 %v2486_v62  ;;  %v317_v26 = vld [vmem:[%s5110_s1 + $0x1e0] sm:$0xff]  ;;  %v319_v29 = vld [vmem:[%s5110_s1 + $0x1f0] sm:$0xff]  ;;  %v326_v31 = vld [vmem:[%s5110_s1 + $0x228] sm:$0xff] }
  0x23   : > { %2615 = vmatpush1.bf16.msra.mxu1 %v2614_v63  ;;  %2489 = vmatprep.subr.bf16.mxu0 %v2488_v0  ;;  %v324_v32 = vld [vmem:[%s5110_s1 + $0x218] sm:$0xff]  ;;  %v2498_v34 = vpack.c.bf16 %v317_v26, %v313_v25  ;;  %v2626_v35 = vpack.c.bf16 %v319_v29, %v315_v27  ;;  %v2500_v36 = vpack.c.bf16 %v326_v31, %v322_v30  ;;  %v321_v37 = vld [vmem:[%s5110_s1 + $0x200] sm:$0xff]  ;;  %v323_v39 = vld [vmem:[%s5110_s1 + $0x210] sm:$0xff] }
  0x24   : > { %2617 = vmatprep.subr.bf16.mxu1 %v2616_v4  ;;  %v328_v33 = vld [vmem:[%s5110_s1 + $0x238] sm:$0xff]  ;;  %v325_v38 = vld [vmem:[%s5110_s1 + $0x220] sm:$0xff]  ;;  %v327_v41 = vld [vmem:[%s5110_s1 + $0x230] sm:$0xff] }
  0x25   : > { %v2628_v40 = vpack.c.bf16 %v328_v33, %v324_v32  ;;  %v330_v42 = vld [vmem:[%s5110_s1 + $0x248] sm:$0xff]  ;;  %v332_v44 = vld [vmem:[%s5110_s1 + $0x258] sm:$0xff]  ;;  %v2502_v46 = vpack.c.bf16 %v325_v38, %v321_v37  ;;  %v2630_v47 = vpack.c.bf16 %v327_v41, %v323_v39  ;;  %v329_v49 = vld [vmem:[%s5110_s1 + $0x240] sm:$0xff] }
  0x26   : > { %2491 = vmatpush1.bf16.msra.mxu0 %v2490_v10  ;;  %v334_v43 = vld [vmem:[%s5110_s1 + $0x268] sm:$0xff]  ;;  %v336_v45 = vld [vmem:[%s5110_s1 + $0x278] sm:$0xff]  ;;  %v333_v50 = vld [vmem:[%s5110_s1 + $0x260] sm:$0xff] }
  0x27   : > { %2619 = vmatpush1.bf16.msra.mxu1 %v2618_v11  ;;  %2493 = vmatprep.subr.bf16.mxu0 %v2492_v12  ;;  %v2504_v48 = vpack.c.bf16 %v334_v43, %v330_v42  ;;  %v331_v51 = vld [vmem:[%s5110_s1 + $0x250] sm:$0xff]  ;;  %v2632_v52 = vpack.c.bf16 %v336_v45, %v332_v44  ;;  %v338_v54 = vld [vmem:[%s5110_s1 + $0x288] sm:$0xff]  ;;  %v340_v56 = vld [vmem:[%s5110_s1 + $0x298] sm:$0xff]  ;;  %v2506_v58 = vpack.c.bf16 %v333_v50, %v329_v49 }
  0x28   : > { %2621 = vmatprep.subr.bf16.mxu1 %v2620_v16  ;;  %v335_v53 = vld [vmem:[%s5110_s1 + $0x270] sm:$0xff]  ;;  %v342_v55 = vld [vmem:[%s5110_s1 + $0x2a8] sm:$0xff]  ;;  %v344_v57 = vld [vmem:[%s5110_s1 + $0x2b8] sm:$0xff] }
  0x29   : > { %v2634_v59 = vpack.c.bf16 %v335_v53, %v331_v51  ;;  %v2508_v60 = vpack.c.bf16 %v342_v55, %v338_v54  ;;  %v337_v61 = vld [vmem:[%s5110_s1 + $0x280] sm:$0xff]  ;;  %v339_v63 = vld [vmem:[%s5110_s1 + $0x290] sm:$0xff]  ;;  %v2636_v0 = vpack.c.bf16 %v344_v57, %v340_v56  ;;  %v346_v2 = vld [vmem:[%s5110_s1 + $0x2c8] sm:$0xff] }
  0x2a   : > { %2495 = vmatpush1.bf16.msra.mxu0 %v2494_v22  ;;  %v341_v62 = vld [vmem:[%s5110_s1 + $0x2a0] sm:$0xff]  ;;  %v343_v1 = vld [vmem:[%s5110_s1 + $0x2b0] sm:$0xff]  ;;  %v350_v3 = vld [vmem:[%s5110_s1 + $0x2e8] sm:$0xff] }
  0x2b   : > { %2623 = vmatpush1.bf16.msra.mxu1 %v2622_v23  ;;  %2497 = vmatprep.subr.bf16.mxu0 %v2496_v24  ;;  %v348_v4 = vld [vmem:[%s5110_s1 + $0x2d8] sm:$0xff]  ;;  %v2510_v6 = vpack.c.bf16 %v341_v62, %v337_v61  ;;  %v345_v7 = vld [vmem:[%s5110_s1 + $0x2c0] sm:$0xff]  ;;  %v2638_v8 = vpack.c.bf16 %v343_v1, %v339_v63  ;;  %v2512_v9 = vpack.c.bf16 %v350_v3, %v346_v2  ;;  %v347_v11 = vld [vmem:[%s5110_s1 + $0x2d0] sm:$0xff] }
  0x2c   : > { %2625 = vmatprep.subr.bf16.mxu1 %v2624_v28  ;;  %v352_v5 = vld [vmem:[%s5110_s1 + $0x2f8] sm:$0xff]  ;;  %v349_v10 = vld [vmem:[%s5110_s1 + $0x2e0] sm:$0xff]  ;;  %v351_v12 = vld [vmem:[%s5110_s1 + $0x2f0] sm:$0xff] }
  0x2d   : > { %v2640_v13 = vpack.c.bf16 %v352_v5, %v348_v4  ;;  %v354_v14 = vld [vmem:[%s5110_s1 + $0x308] sm:$0xff]  ;;  %v356_v17 = vld [vmem:[%s5110_s1 + $0x318] sm:$0xff]  ;;  %v2514_v19 = vpack.c.bf16 %v349_v10, %v345_v7  ;;  %v2642_v20 = vpack.c.bf16 %v351_v12, %v347_v11  ;;  %v353_v22 = vld [vmem:[%s5110_s1 + $0x300] sm:$0xff] }
  0x2e   : > { %2499 = vmatpush1.bf16.msra.mxu0 %v2498_v34  ;;  %v358_v15 = vld [vmem:[%s5110_s1 + $0x328] sm:$0xff]  ;;  %v360_v18 = vld [vmem:[%s5110_s1 + $0x338] sm:$0xff]  ;;  %v357_v23 = vld [vmem:[%s5110_s1 + $0x320] sm:$0xff] }
  0x2f   : > { %2627 = vmatpush1.bf16.msra.mxu1 %v2626_v35  ;;  %2501 = vmatprep.subr.bf16.mxu0 %v2500_v36  ;;  %v250_v16 = vld [vmem:[%s3282_s19 + $0x8] sm:$0xff]  ;;  %v2516_v21 = vpack.c.bf16 %v358_v15, %v354_v14  ;;  %v355_v24 = vld [vmem:[%s5110_s1 + $0x310] sm:$0xff]  ;;  %v2644_v25 = vpack.c.bf16 %v360_v18, %v356_v17  ;;  %v364_v29 = vld [vmem:[%s5110_s1 + $0x358] sm:$0xff]  ;;  %v2518_v31 = vpack.c.bf16 %v357_v23, %v353_v22 }
  0x30   : > { %2629 = vmatprep.subr.bf16.mxu1 %v2628_v40  ;;  %577 = vmatprep.mubr.f32.mxu0 %v250_v16  ;;  %v359_v26 = vld [vmem:[%s5110_s1 + $0x330] sm:$0xff]  ;;  %v362_v27 = vld [vmem:[%s5110_s1 + $0x348] sm:$0xff]  ;;  %v368_v30 = vld [vmem:[%s5110_s1 + $0x378] sm:$0xff] }
  0x31   : > { %731 = vmatprep.mubr.f32.mxu1 %v250_v16  ;;  %v366_v28 = vld [vmem:[%s5110_s1 + $0x368] sm:$0xff]  ;;  %v2646_v32 = vpack.c.bf16 %v359_v26, %v355_v24  ;;  %v361_v34 = vld [vmem:[%s5110_s1 + $0x340] sm:$0xff]  ;;  %v363_v36 = vld [vmem:[%s5110_s1 + $0x350] sm:$0xff]  ;;  %v2648_v37 = vpack.c.bf16 %v368_v30, %v364_v29 }
  0x32   : > { %2503 = vmatpush1.bf16.msra.mxu0 %v2502_v46  ;;  %v2520_v33 = vpack.c.bf16 %v366_v28, %v362_v27  ;;  %v365_v35 = vld [vmem:[%s5110_s1 + $0x360] sm:$0xff]  ;;  %v367_v38 = vld [vmem:[%s5110_s1 + $0x370] sm:$0xff]  ;;  %v370_v39 = vld [vmem:[%s5110_s1 + $0x388] sm:$0xff] }
  0x33   : > { %2631 = vmatpush1.bf16.msra.mxu1 %v2630_v47  ;;  %2505 = vmatprep.subr.bf16.mxu0 %v2504_v48  ;;  %v374_v40 = vld [vmem:[%s5110_s1 + $0x3a8] sm:$0xff]  ;;  %v372_v41 = vld [vmem:[%s5110_s1 + $0x398] sm:$0xff]  ;;  %v2522_v43 = vpack.c.bf16 %v365_v35, %v361_v34  ;;  %v2650_v44 = vpack.c.bf16 %v367_v38, %v363_v36  ;;  %v369_v46 = vld [vmem:[%s5110_s1 + $0x380] sm:$0xff] }
  0x34   : > { %2633 = vmatprep.subr.bf16.mxu1 %v2632_v52  ;;  %v376_v42 = vld [vmem:[%s5110_s1 + $0x3b8] sm:$0xff]  ;;  %v2524_v45 = vpack.c.bf16 %v374_v40, %v370_v39  ;;  %v373_v47 = vld [vmem:[%s5110_s1 + $0x3a0] sm:$0xff]  ;;  %v371_v48 = vld [vmem:[%s5110_s1 + $0x390] sm:$0xff] }
  0x35   : > { %v2652_v49 = vpack.c.bf16 %v376_v42, %v372_v41  ;;  %v375_v50 = vld [vmem:[%s5110_s1 + $0x3b0] sm:$0xff]  ;;  %v378_v51 = vld [vmem:[%s5110_s1 + $0x3c8] sm:$0xff]  ;;  %v380_v53 = vld [vmem:[%s5110_s1 + $0x3d8] sm:$0xff]  ;;  %v2526_v55 = vpack.c.bf16 %v373_v47, %v369_v46 }
  0x36   : > { %2507 = vmatpush1.bf16.msra.mxu0 %v2506_v58  ;;  %v382_v52 = vld [vmem:[%s5110_s1 + $0x3e8] sm:$0xff]  ;;  %v384_v54 = vld [vmem:[%s5110_s1 + $0x3f8] sm:$0xff]  ;;  %v2654_v56 = vpack.c.bf16 %v375_v50, %v371_v48  ;;  %v377_v58 = vld [vmem:[%s5110_s1 + $0x3c0] sm:$0xff] }
  0x37   : > { %2635 = vmatpush1.bf16.msra.mxu1 %v2634_v59  ;;  %2509 = vmatprep.subr.bf16.mxu0 %v2508_v60  ;;  %v2528_v57 = vpack.c.bf16 %v382_v52, %v378_v51  ;;  %v381_v59 = vld [vmem:[%s5110_s1 + $0x3e0] sm:$0xff]  ;;  %v379_v60 = vld [vmem:[%s5110_s1 + $0x3d0] sm:$0xff]  ;;  %v2656_v61 = vpack.c.bf16 %v384_v54, %v380_v53  ;;  %v386_v63 = vld [vmem:[%s5110_s1 + $0x408] sm:$0xff] }
  0x38   : > { %2637 = vmatprep.subr.bf16.mxu1 %v2636_v0  ;;  %v383_v62 = vld [vmem:[%s5110_s1 + $0x3f0] sm:$0xff]  ;;  %v390_v0 = vld [vmem:[%s5110_s1 + $0x428] sm:$0xff]  ;;  %v388_v1 = vld [vmem:[%s5110_s1 + $0x418] sm:$0xff]  ;;  %v2530_v3 = vpack.c.bf16 %v381_v59, %v377_v58 }
  0x39   : > { %v392_v2 = vld [vmem:[%s5110_s1 + $0x438] sm:$0xff]  ;;  %v2658_v4 = vpack.c.bf16 %v383_v62, %v379_v60  ;;  %v2532_v5 = vpack.c.bf16 %v390_v0, %v386_v63  ;;  %v389_v7 = vld [vmem:[%s5110_s1 + $0x420] sm:$0xff]  ;;  %v391_v10 = vld [vmem:[%s5110_s1 + $0x430] sm:$0xff] }
  0x3a   : > { %2511 = vmatpush1.bf16.msra.mxu0 %v2510_v6  ;;  %v385_v6 = vld [vmem:[%s5110_s1 + $0x400] sm:$0xff]  ;;  %v394_v11 = vld [vmem:[%s5110_s1 + $0x448] sm:$0xff]  ;;  %v400_v14 = vld [vmem:[%s5110_s1 + $0x478] sm:$0xff] }
  0x3b   : > { %2639 = vmatpush1.bf16.msra.mxu1 %v2638_v8  ;;  %2513 = vmatprep.subr.bf16.mxu0 %v2512_v9  ;;  %v387_v8 = vld [vmem:[%s5110_s1 + $0x410] sm:$0xff]  ;;  %v2660_v9 = vpack.c.bf16 %v392_v2, %v388_v1  ;;  %v398_v12 = vld [vmem:[%s5110_s1 + $0x468] sm:$0xff]  ;;  %v249_v15 = vld [vmem:[%s3282_s19] sm:$0xff]  ;;  %v2534_v16 = vpack.c.bf16 %v389_v7, %v385_v6 }
  0x3c   : > { %2641 = vmatprep.subr.bf16.mxu1 %v2640_v13  ;;  %v396_v13 = vld [vmem:[%s5110_s1 + $0x458] sm:$0xff]  ;;  %v2662_v17 = vpack.c.bf16 %v391_v10, %v387_v8  ;;  %v2536_v18 = vpack.c.bf16 %v398_v12, %v394_v11  ;;  %v399_v23 = vld [vmem:[%s5110_s1 + $0x470] sm:$0xff]  ;;  %v402_v24 = vld [vmem:[%s5110_s1 + $0x488] sm:$0xff] }
  0x3d   : > { %v2664_v22 = vpack.c.bf16 %v400_v14, %v396_v13  ;;  %v404_v26 = vld [vmem:[%s5110_s1 + $0x498] sm:$0xff]  ;;  %v407_v35 = vld [vmem:[%s5110_s1 + $0x4b0] sm:$0xff]  ;;  %v410_v36 = vld [vmem:[%s5110_s1 + $0x4c8] sm:$0xff] }
  0x3e   : > { %2515 = vmatpush1.bf16.msra.mxu0 %v2514_v19  ;;  %v393_v19 = vld [vmem:[%s5110_s1 + $0x440] sm:$0xff]  ;;  %v408_v27 = vld [vmem:[%s5110_s1 + $0x4b8] sm:$0xff]  ;;  %v415_v47 = vld [vmem:[%s5110_s1 + $0x4f0] sm:$0xff] }
  0x3f   : > { %2643 = vmatpush1.bf16.msra.mxu1 %v2642_v20  ;;  %2517 = vmatprep.subr.bf16.mxu0 %v2516_v21  ;;  %v397_v20 = vld [vmem:[%s5110_s1 + $0x460] sm:$0xff]  ;;  %v395_v21 = vld [vmem:[%s5110_s1 + $0x450] sm:$0xff]  ;;  %v2668_v34 = vpack.c.bf16 %v408_v27, %v404_v26  ;;  %v412_v38 = vld [vmem:[%s5110_s1 + $0x4d8] sm:$0xff] }
  0x40   : > { %2645 = vmatprep.subr.bf16.mxu1 %v2644_v25  ;;  %v406_v25 = vld [vmem:[%s5110_s1 + $0x4a8] sm:$0xff]  ;;  %v2538_v28 = vpack.c.bf16 %v397_v20, %v393_v19  ;;  %v2666_v29 = vpack.c.bf16 %v399_v23, %v395_v21  ;;  %v416_v39 = vld [vmem:[%s5110_s1 + $0x4f8] sm:$0xff]  ;;  %v423_v59 = vld [vmem:[%s5110_s1 + $0x530] sm:$0xff] }
  0x41   : > { %v2540_v30 = vpack.c.bf16 %v406_v25, %v402_v24  ;;  %v2672_v46 = vpack.c.bf16 %v416_v39, %v412_v38  ;;  %v418_v48 = vld [vmem:[%s5110_s1 + $0x508] sm:$0xff]  ;;  %v420_v50 = vld [vmem:[%s5110_s1 + $0x518] sm:$0xff]  ;;  %v431_v7 = vld [vmem:[%s5110_s1 + $0x570] sm:$0xff] }
  0x42   : > { %2519 = vmatpush1.bf16.msra.mxu0 %v2518_v31  ;;  %v401_v31 = vld [vmem:[%s5110_s1 + $0x480] sm:$0xff]  ;;  %v424_v51 = vld [vmem:[%s5110_s1 + $0x538] sm:$0xff]  ;;  %v426_v60 = vld [vmem:[%s5110_s1 + $0x548] sm:$0xff] }
  0x43   : > { %2647 = vmatpush1.bf16.msra.mxu1 %v2646_v32  ;;  %2521 = vmatprep.subr.bf16.mxu0 %v2520_v33  ;;  %v405_v32 = vld [vmem:[%s5110_s1 + $0x4a0] sm:$0xff]  ;;  %v403_v33 = vld [vmem:[%s5110_s1 + $0x490] sm:$0xff]  ;;  %v2676_v58 = vpack.c.bf16 %v424_v51, %v420_v50  ;;  %v428_v62 = vld [vmem:[%s5110_s1 + $0x558] sm:$0xff] }
  0x44   : > { %2649 = vmatprep.subr.bf16.mxu1 %v2648_v37  ;;  %v414_v37 = vld [vmem:[%s5110_s1 + $0x4e8] sm:$0xff]  ;;  %v2542_v40 = vpack.c.bf16 %v405_v32, %v401_v31  ;;  %v2670_v41 = vpack.c.bf16 %v407_v35, %v403_v33  ;;  %v432_v63 = vld [vmem:[%s5110_s1 + $0x578] sm:$0xff]  ;;  %v433_v14 = vld [vmem:[%s5110_s1 + $0x580] sm:$0xff] }
  0x45   : > { %v2544_v42 = vpack.c.bf16 %v414_v37, %v410_v36  ;;  %v2680_v6 = vpack.c.bf16 %v432_v63, %v428_v62  ;;  %v434_v8 = vld [vmem:[%s5110_s1 + $0x588] sm:$0xff]  ;;  %v436_v10 = vld [vmem:[%s5110_s1 + $0x598] sm:$0xff]  ;;  %v435_v19 = vld [vmem:[%s5110_s1 + $0x590] sm:$0xff] }
  0x46   : > { %2523 = vmatpush1.bf16.msra.mxu0 %v2522_v43  ;;  %v409_v43 = vld [vmem:[%s5110_s1 + $0x4c0] sm:$0xff]  ;;  %v440_v11 = vld [vmem:[%s5110_s1 + $0x5b8] sm:$0xff]  ;;  %v254_v12 = vld [vmem:[%s3282_s19 + $0x28] sm:$0xff] }
  0x47   : > { %2651 = vmatpush1.bf16.msra.mxu1 %v2650_v44  ;;  %2525 = vmatprep.subr.bf16.mxu0 %v2524_v45  ;;  %v413_v44 = vld [vmem:[%s5110_s1 + $0x4e0] sm:$0xff]  ;;  %v411_v45 = vld [vmem:[%s5110_s1 + $0x4d0] sm:$0xff]  ;;  %v2684_v21 = vpack.c.bf16 %v440_v11, %v436_v10  ;;  %v446_v23 = vld [vmem:[%s5110_s1 + $0x5e8] sm:$0xff] }
  0x48   : > { %2653 = vmatprep.subr.bf16.mxu1 %v2652_v49  ;;  %v422_v49 = vld [vmem:[%s5110_s1 + $0x528] sm:$0xff]  ;;  %v2546_v52 = vpack.c.bf16 %v413_v44, %v409_v43  ;;  %v2674_v53 = vpack.c.bf16 %v415_v47, %v411_v45  ;;  %v439_v20 = vld [vmem:[%s5110_s1 + $0x5b0] sm:$0xff]  ;;  %v252_v24 = vld [vmem:[%s3282_s19 + $0x18] sm:$0xff] }
  0x49   : > { %v2548_v54 = vpack.c.bf16 %v422_v49, %v418_v48  ;;  %v444_v25 = vld [vmem:[%s5110_s1 + $0x5d8] sm:$0xff]  ;;  %v445_v31 = vld [vmem:[%s5110_s1 + $0x5e0] sm:$0xff]  ;;  %v443_v32 = vld [vmem:[%s5110_s1 + $0x5d0] sm:$0xff] }
  0x4a   : > { %2527 = vmatpush1.bf16.msra.mxu0 %v2526_v55  ;;  %v417_v55 = vld [vmem:[%s5110_s1 + $0x500] sm:$0xff]  ;;  %v448_v26 = vld [vmem:[%s5110_s1 + $0x5f8] sm:$0xff]  ;;  %v450_v35 = vld [vmem:[%s5110_s1 + $0x608] sm:$0xff] }
  0x4b   : > { %2655 = vmatpush1.bf16.msra.mxu1 %v2654_v56  ;;  %2529 = vmatprep.subr.bf16.mxu0 %v2528_v57  ;;  %v421_v56 = vld [vmem:[%s5110_s1 + $0x520] sm:$0xff]  ;;  %v419_v57 = vld [vmem:[%s5110_s1 + $0x510] sm:$0xff]  ;;  %v2688_v33 = vpack.c.bf16 %v448_v26, %v444_v25  ;;  %v454_v36 = vld [vmem:[%s5110_s1 + $0x628] sm:$0xff] }
  0x4c   : > { %2657 = vmatprep.subr.bf16.mxu1 %v2656_v61  ;;  %v430_v61 = vld [vmem:[%s5110_s1 + $0x568] sm:$0xff]  ;;  %v2550_v0 = vpack.c.bf16 %v421_v56, %v417_v55  ;;  %v2678_v1 = vpack.c.bf16 %v423_v59, %v419_v57  ;;  %v452_v37 = vld [vmem:[%s5110_s1 + $0x618] sm:$0xff]  ;;  %v453_v43 = vld [vmem:[%s5110_s1 + $0x620] sm:$0xff] }
  0x4d   : > { %v2552_v2 = vpack.c.bf16 %v430_v61, %v426_v60  ;;  %v456_v38 = vld [vmem:[%s5110_s1 + $0x638] sm:$0xff]  ;;  %v451_v44 = vld [vmem:[%s5110_s1 + $0x610] sm:$0xff]  ;;  %v458_v47 = vld [vmem:[%s5110_s1 + $0x648] sm:$0xff] }
  0x4e   : > { %2531 = vmatpush1.bf16.msra.mxu0 %v2530_v3  ;;  %v425_v3 = vld [vmem:[%s5110_s1 + $0x540] sm:$0xff]  ;;  %v2692_v45 = vpack.c.bf16 %v456_v38, %v452_v37  ;;  %v462_v48 = vld [vmem:[%s5110_s1 + $0x668] sm:$0xff]  ;;  %v460_v49 = vld [vmem:[%s5110_s1 + $0x658] sm:$0xff] }
  0x4f   : > { %2659 = vmatpush1.bf16.msra.mxu1 %v2658_v4  ;;  %2533 = vmatprep.subr.bf16.mxu0 %v2532_v5  ;;  %v429_v4 = vld [vmem:[%s5110_s1 + $0x560] sm:$0xff]  ;;  %v427_v5 = vld [vmem:[%s5110_s1 + $0x550] sm:$0xff]  ;;  %v464_v50 = vld [vmem:[%s5110_s1 + $0x678] sm:$0xff] }
  0x50   : > { %2661 = vmatprep.subr.bf16.mxu1 %v2660_v9  ;;  %v438_v9 = vld [vmem:[%s5110_s1 + $0x5a8] sm:$0xff]  ;;  %v2554_v13 = vpack.c.bf16 %v429_v4, %v425_v3  ;;  %v461_v55 = vld [vmem:[%s5110_s1 + $0x660] sm:$0xff]  ;;  %v459_v56 = vld [vmem:[%s5110_s1 + $0x650] sm:$0xff]  ;;  %v2696_v57 = vpack.c.bf16 %v464_v50, %v460_v49 }
  0x51   : > { %578 = vmatmul.mubr.f32.vlgmr.msra.gmra.mrb[0].mxu0 %v249_v15  ;;  %v466_v59 = vld [vmem:[%s5110_s1 + $0x688] sm:$0xff]  ;;  %v468_v61 = vld [vmem:[%s5110_s1 + $0x698] sm:$0xff]  ;;  %v469_v3 = vld [vmem:[%s5110_s1 + $0x6a0] sm:$0xff] }
  0x52   : > { %2535 = vmatpush1.bf16.msra.mxu0 %v2534_v16  ;;  %732 = vmatmul.mubr.f32.vlgmr.msra.gmra.mrb[0].mxu1 %v249_v15  ;;  %v253_v15 = vld [vmem:[%s3282_s19 + $0x20] sm:$0xff]  ;;  %v2682_v16 = vpack.c.bf16 %v431_v7, %v427_v5  ;;  %v470_v60 = vld [vmem:[%s5110_s1 + $0x6a8] sm:$0xff]  ;;  %v472_v62 = vld [vmem:[%s5110_s1 + $0x6b8] sm:$0xff] }
  0x53   : > { %2663 = vmatpush1.bf16.msra.mxu1 %v2662_v17  ;;  %2537 = vmatprep.subr.bf16.mxu0 %v2536_v18  ;;  %v2556_v17 = vpack.c.bf16 %v438_v9, %v434_v8  ;;  %v437_v18 = vld [vmem:[%s5110_s1 + $0x5a0] sm:$0xff]  ;;  %v467_v4 = vld [vmem:[%s5110_s1 + $0x690] sm:$0xff]  ;;  %v2700_v5 = vpack.c.bf16 %v472_v62, %v468_v61  ;;  %v474_v7 = vld [vmem:[%s5110_s1 + $0x6c8] sm:$0xff] }
  0x54   : > { %2665 = vmatprep.subr.bf16.mxu1 %v2664_v22  ;;  %583 = vmatprep.mubr.f32.mxu0 %v254_v12  ;;  %v442_v22 = vld [vmem:[%s5110_s1 + $0x5c8] sm:$0xff]  ;;  %v2558_v27 = vpack.c.bf16 %v437_v18, %v433_v14  ;;  %v476_v9 = vld [vmem:[%s5110_s1 + $0x6d8] sm:$0xff]  ;;  %v473_v14 = vld [vmem:[%s5110_s1 + $0x6c0] sm:$0xff] }
  0x55   : > { %737 = vmatprep.mubr.f32.mxu1 %v254_v12  ;;  %584 = vmatmul.mubr.f32.gmra.mrb[2].mxu0 %v253_v15  ;;  %v478_v8 = vld [vmem:[%s5110_s1 + $0x6e8] sm:$0xff]  ;;  %v480_v10 = vld [vmem:[%s5110_s1 + $0x6f8] sm:$0xff]  ;;  %v479_v18 = vld [vmem:[%s5110_s1 + $0x6f0] sm:$0xff] }
  0x56   : > { %2539 = vmatpush1.bf16.msra.mxu0 %v2538_v28  ;;  %738 = vmatmul.mubr.f32.gmra.mrb[2].mxu1 %v253_v15  ;;  %v2686_v28 = vpack.c.bf16 %v439_v20, %v435_v19  ;;  %v477_v15 = vld [vmem:[%s5110_s1 + $0x6e0] sm:$0xff]  ;;  %v482_v19 = vld [vmem:[%s5110_s1 + $0x708] sm:$0xff] }
  0x57   : > { %2667 = vmatpush1.bf16.msra.mxu1 %v2666_v29  ;;  %2541 = vmatprep.subr.bf16.mxu0 %v2540_v30  ;;  %v2560_v29 = vpack.c.bf16 %v446_v23, %v442_v22  ;;  %v441_v30 = vld [vmem:[%s5110_s1 + $0x5c0] sm:$0xff]  ;;  %v486_v20 = vld [vmem:[%s5110_s1 + $0x728] sm:$0xff]  ;;  %v488_v22 = vld [vmem:[%s5110_s1 + $0x738] sm:$0xff]  ;;  %v2578_v23 = vpack.c.bf16 %v477_v15, %v473_v14 }
  0x58   : > { %2669 = vmatprep.subr.bf16.mxu1 %v2668_v34  ;;  %654 = vmatprep.mubr.f32.mxu0 %v252_v24  ;;  %v447_v34 = vld [vmem:[%s5110_s1 + $0x5f0] sm:$0xff]  ;;  %v2562_v39 = vpack.c.bf16 %v445_v31, %v441_v30  ;;  %v2580_v25 = vpack.c.bf16 %v486_v20, %v482_v19  ;;  %v481_v26 = vld [vmem:[%s5110_s1 + $0x700] sm:$0xff]  ;;  %v490_v31 = vld [vmem:[%s5110_s1 + $0x748] sm:$0xff] }
  0x59   : > { %808 = vmatprep.mubr.f32.mxu1 %v252_v24  ;;  %v487_v30 = vld [vmem:[%s5110_s1 + $0x730] sm:$0xff]  ;;  %v489_v38 = vld [vmem:[%s5110_s1 + $0x740] sm:$0xff]  ;;  %v854_v19 = vld [vmem:[%s5111_s2 + $0xa8] sm:$0xff] }
  0x5a   : > { %2543 = vmatpush1.bf16.msra.mxu0 %v2542_v40  ;;  %v2690_v40 = vpack.c.bf16 %v447_v34, %v443_v32  ;;  %v494_v32 = vld [vmem:[%s5110_s1 + $0x768] sm:$0xff]  ;;  %v496_v34 = vld [vmem:[%s5110_s1 + $0x778] sm:$0xff]  ;;  %v497_v50 = vld [vmem:[%s5110_s1 + $0x780] sm:$0xff] }
  0x5b   : > { %2671 = vmatpush1.bf16.msra.mxu1 %v2670_v41  ;;  %2545 = vmatprep.subr.bf16.mxu0 %v2544_v42  ;;  %v2564_v41 = vpack.c.bf16 %v454_v36, %v450_v35  ;;  %v449_v42 = vld [vmem:[%s5110_s1 + $0x600] sm:$0xff]  ;;  %v2584_v37 = vpack.c.bf16 %v494_v32, %v490_v31  ;;  %v255_v20 = vld [vmem:[%s3282_s19 + $0x30] sm:$0xff]  ;;  %v858_v32 = vld [vmem:[%s5111_s2 + $0xc8] sm:$0xff] }
  0x5c   : > { %2673 = vmatprep.subr.bf16.mxu1 %v2672_v46  ;;  %v455_v46 = vld [vmem:[%s5110_s1 + $0x630] sm:$0xff]  ;;  %v2566_v51 = vpack.c.bf16 %v453_v43, %v449_v42  ;;  %v498_v43 = vld [vmem:[%s5110_s1 + $0x788] sm:$0xff]  ;;  %v505_v62 = vld [vmem:[%s5110_s1 + $0x7c0] sm:$0xff] }
  0x5d   : > { %v495_v42 = vld [vmem:[%s5110_s1 + $0x770] sm:$0xff]  ;;  %v857_v31 = vld [vmem:[%s5111_s2 + $0xc0] sm:$0xff] }
  0x5e   : > { %2547 = vmatpush1.bf16.msra.mxu0 %v2546_v52  ;;  %v2694_v52 = vpack.c.bf16 %v455_v46, %v451_v44  ;;  %v502_v44 = vld [vmem:[%s5110_s1 + $0x7a8] sm:$0xff]  ;;  %v504_v46 = vld [vmem:[%s5110_s1 + $0x7b8] sm:$0xff] }
  0x5f   : > { %2675 = vmatpush1.bf16.msra.mxu1 %v2674_v53  ;;  %2549 = vmatprep.subr.bf16.mxu0 %v2548_v54  ;;  %v2568_v53 = vpack.c.bf16 %v462_v48, %v458_v47  ;;  %v457_v54 = vld [vmem:[%s5110_s1 + $0x640] sm:$0xff]  ;;  %v2588_v49 = vpack.c.bf16 %v502_v44, %v498_v43  ;;  %v862_v44 = vld [vmem:[%s5111_s2 + $0xe8] sm:$0xff] }
  0x60   : > { %2677 = vmatprep.subr.bf16.mxu1 %v2676_v58  ;;  %v463_v58 = vld [vmem:[%s5110_s1 + $0x670] sm:$0xff]  ;;  %v2570_v63 = vpack.c.bf16 %v461_v55, %v457_v54  ;;  %v506_v55 = vld [vmem:[%s5110_s1 + $0x7c8] sm:$0xff]  ;;  %v861_v43 = vld [vmem:[%s5111_s2 + $0xe0] sm:$0xff] }
  0x61   : > { %v503_v54 = vld [vmem:[%s5110_s1 + $0x7b0] sm:$0xff] }
  0x62   : > { %2551 = vmatpush1.bf16.msra.mxu0 %v2550_v0  ;;  %v2698_v0 = vpack.c.bf16 %v463_v58, %v459_v56  ;;  %v510_v56 = vld [vmem:[%s5110_s1 + $0x7e8] sm:$0xff]  ;;  %v512_v58 = vld [vmem:[%s5110_s1 + $0x7f8] sm:$0xff] }
  0x63   : > { %2679 = vmatpush1.bf16.msra.mxu1 %v2678_v1  ;;  %2553 = vmatprep.subr.bf16.mxu0 %v2552_v2  ;;  %v2572_v1 = vpack.c.bf16 %v470_v60, %v466_v59  ;;  %v465_v2 = vld [vmem:[%s5110_s1 + $0x680] sm:$0xff]  ;;  %v2592_v61 = vpack.c.bf16 %v510_v56, %v506_v55 }
  0x64   : > { %2681 = vmatprep.subr.bf16.mxu1 %v2680_v6  ;;  %v471_v6 = vld [vmem:[%s5110_s1 + $0x6b0] sm:$0xff]  ;;  %v2574_v11 = vpack.c.bf16 %v469_v3, %v465_v2  ;;  %v849_v3 = vld [vmem:[%s5111_s2 + $0x80] sm:$0xff] }
  0x65   : > { %v2702_v12 = vpack.c.bf16 %v471_v6, %v467_v4  ;;  %v511_v2 = vld [vmem:[%s5110_s1 + $0x7f0] sm:$0xff]  ;;  %v850_v4 = vld [vmem:[%s5111_s2 + $0x88] sm:$0xff] }
  0x66   : > { %2555 = vmatpush1.bf16.msra.mxu0 %v2554_v13  ;;  %v2576_v13 = vpack.c.bf16 %v478_v8, %v474_v7  ;;  %v2724_v7 = vpack.c.bf16 %v850_v4, %v849_v3  ;;  %v833_v8 = vld [vmem:[%s5111_s2] sm:$0xff] }
  0x67   : > { %2683 = vmatpush1.bf16.msra.mxu1 %v2682_v16  ;;  %2557 = vmatprep.subr.bf16.mxu0 %v2556_v17  ;;  %v475_v16 = vld [vmem:[%s5110_s1 + $0x6d0] sm:$0xff]  ;;  %v2704_v17 = vpack.c.bf16 %v480_v10, %v476_v9  ;;  %v834_v9 = vld [vmem:[%s5111_s2 + $0x8] sm:$0xff] }
  0x68   : > { %2685 = vmatprep.subr.bf16.mxu1 %v2684_v21  ;;  %v484_v21 = vld [vmem:[%s5110_s1 + $0x718] sm:$0xff]  ;;  %v2706_v24 = vpack.c.bf16 %v479_v18, %v475_v16  ;;  %v851_v10 = vld [vmem:[%s5111_s2 + $0x90] sm:$0xff]  ;;  %v2726_v14 = vpack.c.bf16 %v834_v9, %v833_v8  ;;  %v853_v18 = vld [vmem:[%s5111_s2 + $0xa0] sm:$0xff] }
  0x69   : > { %v835_v16 = vld [vmem:[%s5111_s2 + $0x10] sm:$0xff] }
  0x6a   : > { %2559 = vmatpush1.bf16.msra.mxu0 %v2558_v27  ;;  %v485_v27 = vld [vmem:[%s5110_s1 + $0x720] sm:$0xff] }
  0x6b   : > { %2687 = vmatpush1.bf16.msra.mxu1 %v2686_v28  ;;  %2561 = vmatprep.subr.bf16.mxu0 %v2560_v29  ;;  %v483_v28 = vld [vmem:[%s5110_s1 + $0x710] sm:$0xff]  ;;  %v2708_v29 = vpack.c.bf16 %v488_v22, %v484_v21  ;;  %v2582_v35 = vpack.c.bf16 %v485_v27, %v481_v26  ;;  %v2732_v22 = vpack.c.bf16 %v854_v19, %v853_v18  ;;  %v856_v26 = vld [vmem:[%s5111_s2 + $0xb8] sm:$0xff] }
  0x6c   : > { %2689 = vmatprep.subr.bf16.mxu1 %v2688_v33  ;;  %v492_v33 = vld [vmem:[%s5110_s1 + $0x758] sm:$0xff]  ;;  %v2710_v36 = vpack.c.bf16 %v487_v30, %v483_v28 }
  0x6d   : > { %v840_v30 = vld [vmem:[%s5111_s2 + $0x38] sm:$0xff] }
  0x6e   : > { %2563 = vmatpush1.bf16.msra.mxu0 %v2562_v39  ;;  %v493_v39 = vld [vmem:[%s5110_s1 + $0x760] sm:$0xff] }
  0x6f   : > { %2691 = vmatpush1.bf16.msra.mxu1 %v2690_v40  ;;  %2565 = vmatprep.subr.bf16.mxu0 %v2564_v41  ;;  %v491_v40 = vld [vmem:[%s5110_s1 + $0x750] sm:$0xff]  ;;  %v2712_v41 = vpack.c.bf16 %v496_v34, %v492_v33  ;;  %v2586_v47 = vpack.c.bf16 %v493_v39, %v489_v38  ;;  %v2740_v34 = vpack.c.bf16 %v858_v32, %v857_v31  ;;  %v860_v38 = vld [vmem:[%s5111_s2 + $0xd8] sm:$0xff] }
  0x70   : > { %2693 = vmatprep.subr.bf16.mxu1 %v2692_v45  ;;  %v500_v45 = vld [vmem:[%s5110_s1 + $0x798] sm:$0xff]  ;;  %v2714_v48 = vpack.c.bf16 %v495_v42, %v491_v40  ;;  %v966_v31 = vld [vmem:[%s5112_s3 + $0x10] sm:$0xff] }
  0x71   : > { %v844_v42 = vld [vmem:[%s5111_s2 + $0x58] sm:$0xff] }
  0x72   : > { %2567 = vmatpush1.bf16.msra.mxu0 %v2566_v51  ;;  %v501_v51 = vld [vmem:[%s5110_s1 + $0x7a0] sm:$0xff] }
  0x73   : > { %2695 = vmatpush1.bf16.msra.mxu1 %v2694_v52  ;;  %2569 = vmatprep.subr.bf16.mxu0 %v2568_v53  ;;  %v499_v52 = vld [vmem:[%s5110_s1 + $0x790] sm:$0xff]  ;;  %v2716_v53 = vpack.c.bf16 %v504_v46, %v500_v45  ;;  %v2590_v59 = vpack.c.bf16 %v501_v51, %v497_v50  ;;  %v2748_v46 = vpack.c.bf16 %v862_v44, %v861_v43  ;;  %v864_v51 = vld [vmem:[%s5111_s2 + $0xf8] sm:$0xff] }
  0x74   : > { %2697 = vmatprep.subr.bf16.mxu1 %v2696_v57  ;;  %v508_v57 = vld [vmem:[%s5110_s1 + $0x7d8] sm:$0xff]  ;;  %v2718_v60 = vpack.c.bf16 %v503_v54, %v499_v52  ;;  %v863_v50 = vld [vmem:[%s5111_s2 + $0xf0] sm:$0xff] }
  0x75   : > { %v2752_v52 = vpack.c.bf16 %v864_v51, %v863_v50  ;;  %v848_v54 = vld [vmem:[%s5111_s2 + $0x78] sm:$0xff]  ;;  %v974_v44 = vld [vmem:[%s5112_s3 + $0x50] sm:$0xff] }
  0x76   : > { %2571 = vmatpush1.bf16.msra.mxu0 %v2570_v63  ;;  %v509_v63 = vld [vmem:[%s5110_s1 + $0x7e0] sm:$0xff]  ;;  %v978_v50 = vld [vmem:[%s5112_s3 + $0x70] sm:$0xff]  ;;  %v979_v51 = vld [vmem:[%s5112_s3 + $0x78] sm:$0xff] }
  0x77   : > { %2699 = vmatpush1.bf16.msra.mxu1 %v2698_v0  ;;  %2573 = vmatprep.subr.bf16.mxu0 %v2572_v1  ;;  %v507_v0 = vld [vmem:[%s5110_s1 + $0x7d0] sm:$0xff]  ;;  %v2720_v1 = vpack.c.bf16 %v512_v58, %v508_v57 }
  0x78   : > { %2701 = vmatprep.subr.bf16.mxu1 %v2700_v5  ;;  %v2594_v5 = vpack.c.bf16 %v509_v63, %v505_v62  ;;  %v2722_v6 = vpack.c.bf16 %v511_v2, %v507_v0 }
  0x7a   : > { %2575 = vmatpush1.bf16.msra.mxu0 %v2574_v11  ;;  %v852_v11 = vld [vmem:[%s5111_s2 + $0x98] sm:$0xff] }
  0x7b   : > { %2703 = vmatpush1.bf16.msra.mxu1 %v2702_v12  ;;  %2577 = vmatprep.subr.bf16.mxu0 %v2576_v13  ;;  %v251_v12 = vld [vmem:[%s3282_s19 + $0x10] sm:$0xff]  ;;  %v256_v13 = vld [vmem:[%s3282_s19 + $0x38] sm:$0xff]  ;;  %v2728_v15 = vpack.c.bf16 %v852_v11, %v851_v10 }
  0x7c   : > { %2705 = vmatprep.subr.bf16.mxu1 %v2704_v17  ;;  %v836_v17 = vld [vmem:[%s5111_s2 + $0x18] sm:$0xff] }
  0x7d   : > { %v2730_v21 = vpack.c.bf16 %v836_v17, %v835_v16 }
  0x7e   : > { %2579 = vmatpush1.bf16.msra.mxu0 %v2578_v23  ;;  %v837_v23 = vld [vmem:[%s5111_s2 + $0x20] sm:$0xff] }
  0x7f   : > { %2707 = vmatpush1.bf16.msra.mxu1 %v2706_v24  ;;  %2581 = vmatprep.subr.bf16.mxu0 %v2580_v25  ;;  %v838_v24 = vld [vmem:[%s5111_s2 + $0x28] sm:$0xff]  ;;  %v855_v25 = vld [vmem:[%s5111_s2 + $0xb0] sm:$0xff] }
  0x80   : > { %2709 = vmatprep.subr.bf16.mxu1 %v2708_v29  ;;  %v2734_v27 = vpack.c.bf16 %v838_v24, %v837_v23  ;;  %v2736_v28 = vpack.c.bf16 %v856_v26, %v855_v25  ;;  %v839_v29 = vld [vmem:[%s5111_s2 + $0x30] sm:$0xff] }
  0x81   : > { %v2738_v33 = vpack.c.bf16 %v840_v30, %v839_v29  ;;  %v964_v29 = vld [vmem:[%s5112_s3] sm:$0xff]  ;;  %v965_v30 = vld [vmem:[%s5112_s3 + $0x8] sm:$0xff] }
  0x82   : > { %2583 = vmatpush1.bf16.msra.mxu0 %v2582_v35  ;;  %v841_v35 = vld [vmem:[%s5111_s2 + $0x40] sm:$0xff]  ;;  %v2756_v32 = vpack.c.bf16 %v965_v30, %v964_v29  ;;  %v1156_v30 = vld [vmem:[%s5113_s4 + $0x8] sm:$0xff] }
  0x83   : > { %2711 = vmatpush1.bf16.msra.mxu1 %v2710_v36  ;;  %2585 = vmatprep.subr.bf16.mxu0 %v2584_v37  ;;  %v842_v36 = vld [vmem:[%s5111_s2 + $0x48] sm:$0xff]  ;;  %v859_v37 = vld [vmem:[%s5111_s2 + $0xd0] sm:$0xff] }
  0x84   : > { %2713 = vmatprep.subr.bf16.mxu1 %v2712_v41  ;;  %v2742_v39 = vpack.c.bf16 %v842_v36, %v841_v35  ;;  %v2744_v40 = vpack.c.bf16 %v860_v38, %v859_v37  ;;  %v843_v41 = vld [vmem:[%s5111_s2 + $0x50] sm:$0xff]  ;;  %v968_v35 = vld [vmem:[%s5112_s3 + $0x20] sm:$0xff]  ;;  %v969_v36 = vld [vmem:[%s5112_s3 + $0x28] sm:$0xff] }
  0x85   : > { %v2746_v45 = vpack.c.bf16 %v844_v42, %v843_v41  ;;  %v2764_v37 = vpack.c.bf16 %v969_v36, %v968_v35  ;;  %v970_v38 = vld [vmem:[%s5112_s3 + $0x30] sm:$0xff]  ;;  %v972_v41 = vld [vmem:[%s5112_s3 + $0x40] sm:$0xff]  ;;  %v973_v42 = vld [vmem:[%s5112_s3 + $0x48] sm:$0xff] }
  0x86   : > { %2587 = vmatpush1.bf16.msra.mxu0 %v2586_v47  ;;  %v845_v47 = vld [vmem:[%s5111_s2 + $0x60] sm:$0xff]  ;;  %v2772_v43 = vpack.c.bf16 %v973_v42, %v972_v41  ;;  %v1188_v35 = vld [vmem:[%s5113_s4 + $0x108] sm:$0xff] }
  0x87   : > { %2715 = vmatpush1.bf16.msra.mxu1 %v2714_v48  ;;  %2589 = vmatprep.subr.bf16.mxu0 %v2588_v49  ;;  %v846_v48 = vld [vmem:[%s5111_s2 + $0x68] sm:$0xff]  ;;  %v1171_v36 = vld [vmem:[%s5113_s4 + $0x80] sm:$0xff] }
  0x88   : > { %2717 = vmatprep.subr.bf16.mxu1 %v2716_v53  ;;  %v2750_v49 = vpack.c.bf16 %v846_v48, %v845_v47  ;;  %v847_v53 = vld [vmem:[%s5111_s2 + $0x70] sm:$0xff]  ;;  %v976_v47 = vld [vmem:[%s5112_s3 + $0x60] sm:$0xff]  ;;  %v977_v48 = vld [vmem:[%s5112_s3 + $0x68] sm:$0xff] }
  0x89   : > { %v2754_v55 = vpack.c.bf16 %v848_v54, %v847_v53  ;;  %v2372_v53 = vld [vmem:[%s5114_s5] ss:$0 sm:$0xff] }
  0x8a   : > { %2591 = vmatpush1.bf16.msra.mxu0 %v2590_v59  ;;  %2026 = vbcast.lane.b32.xlu1 %v2372_v53, 256 }
  0x8b   : > { %2719 = vmatpush1.bf16.msra.mxu1 %v2718_v60  ;;  %2593 = vmatprep.subr.bf16.mxu0 %v2592_v61 }
  0x8c   : > { %2721 = vmatprep.subr.bf16.mxu1 %v2720_v1 }
  0x8e   : > { %2595 = vmatpush1.bf16.msra.mxu0 %v2594_v5  ;;  %2034 = vbcast.lane.b32.xlu1 %v2372_v53, 272 }
  0x8f   : > { %2723 = vmatpush1.bf16.msra.mxu1 %v2722_v6  ;;  %2725 = vmatprep.subr.bf16.mxu0 %v2724_v7 }
  0x90   : > { %2757 = vmatprep.subr.bf16.mxu1 %v2756_v32 }
  0x91   : > { %655 = vmatmul.mubr.f32.vlgmr.msra.gmra.mrb[0].mxu0 %v251_v12 }
  0x92   : > { %809 = vmatmul.mubr.f32.vlgmr.msra.gmra.mrb[0].mxu1 %v251_v12  ;;  %660 = vmatprep.mubr.f32.mxu0 %v256_v13 }
  0x93   : > { %814 = vmatprep.mubr.f32.mxu1 %v256_v13  ;;  %2727 = vmatpush3.bf16.msra.mxu0 %v2726_v14 }
  0x94   : > { %2729 = vmatprep.subr.bf16.mxu0 %v2728_v15  ;;  %2759 = vmatpush3.bf16.msra.mxu1 %v2756_v32 }
  0x95   : > { %661 = vmatmul.mubr.f32.gmra.mrb[2].mxu0 %v255_v20  ;;  %2038 = vbcast.lane.b32.xlu1 %v2372_v53, 280 }
  0x96   : > { %815 = vmatmul.mubr.f32.gmra.mrb[2].mxu1 %v255_v20 }
  0x97   : > { %2731 = vmatpush3.bf16.msra.mxu0 %v2730_v21 }
  0x98   : > { %2733 = vmatprep.subr.bf16.mxu0 %v2732_v22 }
  0x99   : > { %2042 = vbcast.lane.b32.xlu1 %v2372_v53, 288 }
  0x9b   : > { %2735 = vmatpush3.bf16.msra.mxu0 %v2734_v27 }
  0x9c   : > { %2737 = vmatprep.subr.bf16.mxu0 %v2736_v28 }
  0x9d   : > { %2050 = vbcast.lane.b32.xlu1 %v2372_v53, 304 }
  0x9f   : > { %2739 = vmatpush3.bf16.msra.mxu0 %v2738_v33  ;;  %v967_v33 = vld [vmem:[%s5112_s3 + $0x18] sm:$0xff] }
  0xa0   : > { %2741 = vmatprep.subr.bf16.mxu0 %v2740_v34  ;;  %v2760_v34 = vpack.c.bf16 %v967_v33, %v966_v31 }
  0xa1   : > { %2058 = vbcast.lane.b32.xlu1 %v2372_v53, 320 }
  0xa2   : > { %2761 = vmatprep.subr.bf16.mxu1 %v2760_v34 }
  0xa3   : > { %2743 = vmatpush3.bf16.msra.mxu0 %v2742_v39  ;;  %v971_v39 = vld [vmem:[%s5112_s3 + $0x38] sm:$0xff]  ;;  %2763 = vmatpush3.bf16.msra.mxu1 %v2760_v34 }
  0xa4   : > { %2745 = vmatprep.subr.bf16.mxu0 %v2744_v40  ;;  %2765 = vmatprep.subr.bf16.mxu1 %v2764_v37  ;;  %v2768_v40 = vpack.c.bf16 %v971_v39, %v970_v38 }
  0xa5   : > { %2066 = vbcast.lane.b32.xlu1 %v2372_v53, 336 }
  0xa7   : > { %2747 = vmatpush3.bf16.msra.mxu0 %v2746_v45  ;;  %2767 = vmatpush3.bf16.msra.mxu1 %v2764_v37  ;;  %v975_v45 = vld [vmem:[%s5112_s3 + $0x58] sm:$0xff] }
  0xa8   : > { %2749 = vmatprep.subr.bf16.mxu0 %v2748_v46  ;;  %2769 = vmatprep.subr.bf16.mxu1 %v2768_v40  ;;  %v2776_v46 = vpack.c.bf16 %v975_v45, %v974_v44  ;;  %v1204_v44 = vld [vmem:[%s5113_s4 + $0x188] sm:$0xff]  ;;  %v1155_v45 = vld [vmem:[%s5113_s4] sm:$0xff] }
  0xa9   : > { %2074 = vbcast.lane.b32.xlu1 %v2372_v53, 352 }
  0xab   : > { %2751 = vmatpush3.bf16.msra.mxu0 %v2750_v49  ;;  %2771 = vmatpush3.bf16.msra.mxu1 %v2768_v40  ;;  %v2780_v49 = vpack.c.bf16 %v977_v48, %v976_v47 }
  0xac   : > { %2753 = vmatprep.subr.bf16.mxu0 %v2752_v52  ;;  %2773 = vmatprep.subr.bf16.mxu1 %v2772_v43  ;;  %v2784_v52 = vpack.c.bf16 %v979_v51, %v978_v50 }
  0xaf   : > { %2755 = vmatpush3.bf16.msra.mxu0 %v2754_v55  ;;  %2775 = vmatpush3.bf16.msra.mxu1 %v2772_v43 }
  0xb0   : > { %2777 = vmatprep.subr.bf16.mxu1 %v2776_v46 }
  0xb3   : > { %2779 = vmatpush3.bf16.msra.mxu1 %v2776_v46 }
  0xb4   : > { %2781 = vmatprep.subr.bf16.mxu1 %v2780_v49 }
  0xb7   : > { %2783 = vmatpush3.bf16.msra.mxu1 %v2780_v49 }
  0xb8   : > { %2785 = vmatprep.subr.bf16.mxu1 %v2784_v52 }
  0xbb   : > { %2787 = vmatpush3.bf16.msra.mxu1 %v2784_v52 }
 0x164   : > { %v656_v56 = vpop.f32.mrb[0].mxu0 }
 0x165   : > { %v821_v57 = vmul.f32 %v656_v56, %v656_v56  ;;  %v810_v58 = vpop.f32.mrb[0].mxu1  ;;  %v658_v59 = vpop.f32.mrb[1].mxu0 }
 0x166   : > { %v825_v60 = vmul.f32 %v810_v58, %v810_v58  ;;  %v822_v61 = vmul.f32 %v658_v59, %v658_v59  ;;  %v812_v62 = vpop.f32.mrb[1].mxu1 }
 0x167   : > { %v826_v63 = vmul.f32 %v812_v62, %v812_v62 }
 0x168   : > { %v829_v0 = vadd.f32 %v825_v60, %v821_v57  ;;  %v662_v1 = vpop.f32.mrb[2].mxu0 }
 0x169   : > { %v830_v2 = vadd.f32 %v826_v63, %v822_v61  ;;  %v823_v3 = vmul.f32 %v662_v1, %v662_v1  ;;  %v816_v4 = vpop.f32.mrb[2].mxu1  ;;  %v664_v5 = vpop.f32.mrb[3].mxu0 }
 0x16a   : > { %v827_v6 = vmul.f32 %v816_v4, %v816_v4  ;;  %v824_v7 = vmul.f32 %v664_v5, %v664_v5  ;;  %v818_v8 = vpop.f32.mrb[3].mxu1 }
 0x16b   : > { %v828_v9 = vmul.f32 %v818_v8, %v818_v8  ;;  %929 = vmatprep.mubr.f32.mxu0 %v830_v2  ;;  %v1061_v2 = vlaneseq }
 0x16c   : > { %v831_v10 = vadd.f32 %v827_v6, %v823_v3  ;;  %930 = vmatmul.mubr.f32.vlgmr.msra.gmra.mrb[4].mxu0 %v829_v0  ;;  %v2910_v0 = vmov 1966171168  }
 0x16d   : > { %v832_v11 = vadd.f32 %v828_v9, %v824_v7  ;;  %v1059_v1 = vunpack.c.l.s4 %v2910_v0  ;;  %v3940_v4 = vshrl.u32 %v1061_v2, 7 }
 0x16f   : > { %934 = vmatprep.mubr.f32.mxu0 %v832_v11  ;;  %v1060_v3 = vunpack.c.0.s8 %v1059_v1  ;;  %v1284_v1 = vld [vmem:[%s5113_s4 + $0x408] sm:$0xff] }
 0x170   : > { %935 = vmatmul.mubr.f32.gmra.mrb[6].mxu0 %v831_v10 }
 0x171   : > { %v1063_v5 = vsub.s32 %v1060_v3, %v3940_v4  ;;  %v1203_v3 = vld [vmem:[%s5113_s4 + $0x180] sm:$0xff] }
 0x23f   : > { %v2409_v12 = vpop.f32.mrb[4].mxu0 }
 0x240   : > { %v2410_v13 = vpop.f32.mrb[5].mxu0 }
 0x241   : > { %v2411_v14 = vadd.f32 %v2410_v13, %v2409_v12 }
 0x243   : > { %v940_v15 = vmax.f32 %v2411_v14, 1e-10  ;;  %v2412_v16 = vpop.f32.mrb[6].mxu0 }
 0x244   : > { %v2413_v17 = vpop.f32.mrb[7].mxu0 }
 0x245   : > { %2841 = vlog2.f32 %v940_v15  ;;  %v2414_v18 = vadd.f32 %v2413_v17, %v2412_v16  ;;  %v1413_v16 = vsub.s32 0, %v3940_v4 }
 0x247   : > { %v941_v19 = vmax.f32 %v2414_v18, 1e-10 }
 0x249   : > { %2843 = vlog2.f32 %v941_v19 }
 0x24f   : > { %v2842_v20 = vpop.eup %2841 }
 0x250   : > { %v943_v21 = vmul.f32 0.6931472, %v2842_v20 }
 0x252   : > { %v946_v24 = vmul.f32 0.4342945, %v943_v21 }
 0x253   : > { %v2844_v22 = vpop.eup %2843 }
 0x254   : > { %v945_v23 = vmul.f32 0.6931472, %v2844_v22  ;;  %v3880_v26 = vmul.f32 10.0, %v946_v24  ;;  %v1172_v22 = vld [vmem:[%s5113_s4 + $0x88] sm:$0xff] }
 0x256   : > { %v947_v25 = vmul.f32 0.4342945, %v945_v23 }
 0x258   : > { %v3882_v27 = vmul.f32 10.0, %v947_v25 }
 0x25a   : > { %v950_v28 = vmax.f32 %v3880_v26, %v3882_v27 }
 0x25c   : > { %951 = vmax.xlane.f32.xlu0 %v950_v28 }
 0x272   : > { %2030 = vbcast.lane.b32.xlu0 %v2372_v53, 264 }
 0x276   : > { %2046 = vbcast.lane.b32.xlu0 %v2372_v53, 296 }
 0x27a   : > { %2054 = vbcast.lane.b32.xlu0 %v2372_v53, 312 }
 0x27e   : > { %2062 = vbcast.lane.b32.xlu0 %v2372_v53, 328 }
 0x282   : > { %2070 = vbcast.lane.b32.xlu0 %v2372_v53, 344 }
 0x286   : > { %2078 = vbcast.lane.b32.xlu0 %v2372_v53, 360 }
 0x2e9   : > { %v952_v54 = vpop.xlane.xlu0 %951 }
 0x2ea   : > { %v953_v55 = vrot.slane %v952_v54, 4 }
 0x2ec   : > { %v954_v56 = vmax.f32 %v952_v54, %v953_v55  ;;  %v1220_v54 = vld [vmem:[%s5113_s4 + $0x208] sm:$0xff]  ;;  %v1187_v55 = vld [vmem:[%s5113_s4 + $0x100] sm:$0xff] }
 0x2ee   : > { %v955_v57 = vrot.slane %v954_v56, 2 }
 0x2f0   : > { %v956_v58 = vmax.f32 %v954_v56, %v955_v57  ;;  %v1236_v57 = vld [vmem:[%s5113_s4 + $0x288] sm:$0xff] }
 0x2f2   : > { %v957_v59 = vrot.slane %v956_v58, 1 }
 0x2f4   : > { %v958_v60 = vmax.f32 %v956_v58, %v957_v59 }
 0x2f6   : > { %2796 = vpush %v958_v60 }
 0x327   : > { %s2797_s26 = spop %2796 }
 0x328   : > { %s2371_s11 = sadd.f32 -80.0, %s2797_s26  ;;  %s2850_s26 = sshll.u32 %s2912_s20, 4  ;;  %s2851_s26 = int_to_ptr.vmem [resolvable:$false] %s2850_s26 }
 0x329   : > { %p2853_p0 = scmp.lt.s32.totalorder %s5069_s13, %s2851_s26 }
 0x32a   : > { %v961_v61 = vstv %s2371_s11  ;;  %s2852_s11 = scalar_lea.vmem %s2851_s26, 32 }
 0x32b   : > { %v962_v62 = vmax.f32 %v3880_v26, %v961_v61  ;;  %v963_v63 = vmax.f32 %v3882_v27, %v961_v61  ;;  %p2854_p1 = scmp.lt.s32.totalorder %s2852_s11, %s2846_s25 }
 0x32d   : > { %2465 = vmatprep.mubr.f32.mxu1 %v962_v62  ;;  %p2855_p2 = por %p2854_p1, %p2853_p0 }
 0x32e   : > { %2466 = vmatmul.mubr.f32.vlgmr.msra.gmra.mrb[4].mxu1 %v963_v63 }
 0x32f   : > { %p2856_p3 = pnand %p2855_p2, %p2849_p13 }
 0x401   : > { %v2467_v6 = vpop.f32.mrb[4].mxu1 }
 0x402   : > { %v1046_v7 = vpop.f32.mrb[5].mxu1  ;;  %v1106_v8 = vcombine.high %v2467_v6, %v2467_v6  ;;  %v1113_v11 = vrot.slane %v2467_v6, %v1063_v5  ;;  %v1252_v6 = vld [vmem:[%s5113_s4 + $0x308] sm:$0xff] }
 0x403   : > { %v1057_v9 = vcombine.high %v1046_v7, %v1046_v7  ;;  %v1064_v10 = vrot.slane %v1046_v7, %v1063_v5  ;;  %v1268_v7 = vld [vmem:[%s5113_s4 + $0x388] sm:$0xff] }
 0x404   : > { %v1120_v15 = vrot.slane %v1106_v8, %v1063_v5  ;;  %v1121_v18 = vcombine.high %v1113_v11, %v1113_v11  ;;  %v1129_v23 = vrot.slane %v1113_v11, %v1063_v5  ;;  %v1300_v8 = vld [vmem:[%s5113_s4 + $0x488] sm:$0xff] }
 0x405   : > { %v1071_v12 = vrot.slane %v1057_v9, %v1063_v5  ;;  %v1072_v13 = vcombine.high %v1064_v10, %v1064_v10  ;;  %v1080_v14 = vrot.slane %v1064_v10, %v1063_v5 }
 0x406   : > { %v1122_v21 = vcombine.high %v1120_v15, %v1120_v15  ;;  %v1143_v27 = vrot.slane %v1121_v18, %v1063_v5  ;;  %v1136_v33 = vrot.slane %v1120_v15, %v1063_v5  ;;  %v1151_v37 = vcombine.high %v1129_v23, %v1129_v23 }
 0x407   : > { %v1094_v17 = vrot.slane %v1072_v13, %v1063_v5  ;;  %v1073_v19 = vcombine.high %v1071_v12, %v1071_v12  ;;  %v1102_v20 = vcombine.high %v1080_v14, %v1080_v14  ;;  %v3947_v25 = vrot.slane %v1080_v14, %v1413_v16 }
 0x408   : > { %v1087_v28 = vrot.slane %v1071_v12, %v1063_v5  ;;  %v1150_v34 = vrot.slane %v1122_v21, %v1063_v5  ;;  %v1153_v40 = vcombine.high %v1143_v27, %v1143_v27  ;;  %v3966_v41 = vrot.slane %v1129_v23, %v1413_v16  ;;  %v1332_v21 = vld [vmem:[%s5113_s4 + $0x588] sm:$0xff]  ;;  %v1235_v23 = vld [vmem:[%s5113_s4 + $0x280] sm:$0xff] }
 0x409   : > { %v1104_v24 = vcombine.high %v1094_v17, %v1094_v17  ;;  %v3949_v26 = vrot.slane %v1094_v17, %v1413_v16  ;;  %v1101_v29 = vrot.slane %v1073_v19, %v1063_v5  ;;  %v3954_v31 = vrot.slane %v1102_v20, %v1413_v16  ;;  %v1173_v5 = vld [vmem:[%s5113_s4 + $0x90] sm:$0xff]  ;;  %v1316_v17 = vld [vmem:[%s5113_s4 + $0x508] sm:$0xff]  ;;  %v1219_v19 = vld [vmem:[%s5113_s4 + $0x200] sm:$0xff] }
 0x40a   : > { %v1492_v39 = vmul.f32 %v3947_v25, %v1156_v30  ;;  %v1103_v42 = vcombine.high %v1087_v28, %v1087_v28  ;;  %v3974_v46 = vrot.slane %v1087_v28, %v1413_v16  ;;  %v1152_v50 = vcombine.high %v1136_v33, %v1136_v33  ;;  %v1157_v20 = vld [vmem:[%s5113_s4 + $0x10] sm:$0xff] }
 0x40b   : > { %v1508_v32 = vmul.f32 %v3949_v26, %v1172_v22  ;;  %v3963_v38 = vrot.slane %v1104_v24, %v1413_v16  ;;  %v1105_v43 = vcombine.high %v1101_v29, %v1101_v29  ;;  %v1524_v47 = vmul.f32 %v3954_v31, %v1188_v35  ;;  %v1189_v35 = vld [vmem:[%s5113_s4 + $0x110] sm:$0xff] }
 0x40c   : > { %v1507_v49 = vmul.f32 %v3949_v26, %v1171_v36  ;;  %v1154_v51 = vcombine.high %v1150_v34, %v1150_v34  ;;  %v3978_v52 = vrot.slane %v1143_v27, %v1413_v16  ;;  %v3980_v53 = vrot.slane %v1101_v29, %v1413_v16  ;;  %v1364_v29 = vld [vmem:[%s5113_s4 + $0x688] sm:$0xff] }
 0x40d   : > { %v1762_v48 = vadd.f32 %v1508_v32, %v1492_v39  ;;  %v3988_v56 = vrot.slane %v1151_v37, %v1413_v16  ;;  %v1540_v58 = vmul.f32 %v3963_v38, %v1204_v44  ;;  %v1491_v60 = vmul.f32 %v3947_v25, %v1155_v45  ;;  %v1380_v36 = vld [vmem:[%s5113_s4 + $0x708] sm:$0xff] }
 0x40e   : > { %v3995_v61 = vrot.slane %v1153_v40, %v1413_v16  ;;  %v3997_v62 = vrot.slane %v1136_v33, %v1413_v16  ;;  %v3999_v63 = vrot.slane %v1103_v42, %v1413_v16  ;;  %v4001_v0 = vrot.slane %v1105_v43, %v1413_v16  ;;  %v1396_v37 = vld [vmem:[%s5113_s4 + $0x788] sm:$0xff]  ;;  %v1251_v40 = vld [vmem:[%s5113_s4 + $0x300] sm:$0xff] }
 0x40f   : > { %v1763_v59 = vadd.f32 %v1762_v48, %v1524_v47  ;;  %v1556_v9 = vmul.f32 %v3974_v46, %v1220_v54  ;;  %v1523_v11 = vmul.f32 %v3954_v31, %v1187_v55  ;;  %v1747_v12 = vadd.f32 %v1507_v49, %v1491_v60  ;;  %v1283_v49 = vld [vmem:[%s5113_s4 + $0x400] sm:$0xff] }
 0x410   : > { %v4023_v13 = vrot.slane %v1150_v34, %v1413_v16  ;;  %v4025_v14 = vrot.slane %v1152_v50, %v1413_v16  ;;  %v4027_v15 = vrot.slane %v1154_v51, %v1413_v16  ;;  %v1572_v18 = vmul.f32 %v3980_v53, %v1236_v57  ;;  %v1348_v16 = vld [vmem:[%s5113_s4 + $0x608] sm:$0xff]  ;;  %v1205_v51 = vld [vmem:[%s5113_s4 + $0x190] sm:$0xff]  ;;  %v1267_v55 = vld [vmem:[%s5113_s4 + $0x380] sm:$0xff] }
 0x411   : > { %v1764_v10 = vadd.f32 %v1763_v59, %v1540_v58  ;;  %v1539_v24 = vmul.f32 %v3963_v38, %v1203_v3  ;;  %v1748_v27 = vadd.f32 %v1747_v12, %v1523_v11  ;;  %v1509_v28 = vmul.f32 %v3949_v26, %v1173_v5  ;;  %v1299_v57 = vld [vmem:[%s5113_s4 + $0x480] sm:$0xff] }
 0x412   : > { %v1588_v30 = vmul.f32 %v3999_v63, %v1252_v6  ;;  %v1604_v32 = vmul.f32 %v4001_v0, %v1268_v7  ;;  %v1620_v33 = vmul.f32 %v3966_v41, %v1284_v1  ;;  %v1636_v34 = vmul.f32 %v3978_v52, %v1300_v8  ;;  %v1174_v1 = vld [vmem:[%s5113_s4 + $0x98] sm:$0xff]  ;;  %v1315_v7 = vld [vmem:[%s5113_s4 + $0x500] sm:$0xff] }
 0x413   : > { %v1765_v22 = vadd.f32 %v1764_v10, %v1556_v9  ;;  %v1555_v42 = vmul.f32 %v3974_v46, %v1219_v19  ;;  %v1749_v43 = vadd.f32 %v1748_v27, %v1539_v24  ;;  %v1493_v44 = vmul.f32 %v3947_v25, %v1157_v20  ;;  %v1221_v9 = vld [vmem:[%s5113_s4 + $0x210] sm:$0xff]  ;;  %v1331_v11 = vld [vmem:[%s5113_s4 + $0x580] sm:$0xff]  ;;  %v1158_v20 = vld [vmem:[%s5113_s4 + $0x18] sm:$0xff] }
 0x414   : > { %v1652_v45 = vmul.f32 %v3988_v56, %v1316_v17  ;;  %v4073_v47 = vmul.f32 %v3995_v61, %v1332_v21  ;;  %v4076_v48 = vmul.f32 %v3997_v62, %v1348_v16  ;;  %v1571_v50 = vmul.f32 %v3980_v53, %v1235_v23  ;;  %v1347_v12 = vld [vmem:[%s5113_s4 + $0x600] sm:$0xff]  ;;  %v1237_v23 = vld [vmem:[%s5113_s4 + $0x290] sm:$0xff] }
 0x415   : > { %v1766_v39 = vadd.f32 %v1765_v22, %v1572_v18  ;;  %v1750_v58 = vadd.f32 %v1749_v43, %v1555_v42  ;;  %v1525_v59 = vmul.f32 %v3954_v31, %v1189_v35  ;;  %v1777_v60 = vadd.f32 %v1509_v28, %v1493_v44  ;;  %v1363_v28 = vld [vmem:[%s5113_s4 + $0x680] sm:$0xff] }
 0x416   : > { %v4096_v3 = vmul.f32 %v4023_v13, %v1364_v29  ;;  %v4099_v5 = vmul.f32 %v4025_v14, %v1380_v36  ;;  %v4102_v6 = vmul.f32 %v4027_v15, %v1396_v37  ;;  %v1587_v8 = vmul.f32 %v3999_v63, %v1251_v40  ;;  %v1379_v29 = vld [vmem:[%s5113_s4 + $0x700] sm:$0xff]  ;;  %v1190_v36 = vld [vmem:[%s5113_s4 + $0x118] sm:$0xff]  ;;  %v1253_v40 = vld [vmem:[%s5113_s4 + $0x310] sm:$0xff] }
 0x417   : > { %v1767_v54 = vadd.f32 %v1766_v39, %v1588_v30  ;;  %v1751_v17 = vadd.f32 %v1750_v58, %v1571_v50  ;;  %v1541_v18 = vmul.f32 %v3963_v38, %v1205_v51  ;;  %v1778_v19 = vadd.f32 %v1777_v60, %v1525_v59  ;;  %v1395_v44 = vld [vmem:[%s5113_s4 + $0x780] sm:$0xff]  ;;  %v1269_v50 = vld [vmem:[%s5113_s4 + $0x390] sm:$0xff] }
 0x418   : > { %v1603_v21 = vmul.f32 %v4001_v0, %v1267_v55  ;;  %v1619_v16 = vmul.f32 %v3966_v41, %v1283_v49  ;;  %v1635_v22 = vmul.f32 %v3978_v52, %v1299_v57  ;;  %v1510_v24 = vmul.f32 %v3949_v26, %v1174_v1  ;;  %v1206_v55 = vld [vmem:[%s5113_s4 + $0x198] sm:$0xff]  ;;  %v1285_v58 = vld [vmem:[%s5113_s4 + $0x410] sm:$0xff] }
 0x419   : > { %v1768_v10 = vadd.f32 %v1767_v54, %v1604_v32  ;;  %v1752_v30 = vadd.f32 %v1751_v17, %v1587_v8  ;;  %v1557_v32 = vmul.f32 %v3974_v46, %v1221_v9  ;;  %v1779_v35 = vadd.f32 %v1778_v19, %v1541_v18  ;;  %v1301_v8 = vld [vmem:[%s5113_s4 + $0x490] sm:$0xff] }
 0x41a   : > { %v1651_v37 = vmul.f32 %v3988_v56, %v1315_v7  ;;  %v1683_v39 = vmul.f32 %v3997_v62, %v1347_v12  ;;  %v1494_v42 = vmul.f32 %v3947_v25, %v1158_v20  ;;  %v1573_v51 = vmul.f32 %v3980_v53, %v1237_v23  ;;  %v1175_v12 = vld [vmem:[%s5113_s4 + $0xa0] sm:$0xff]  ;;  %v1333_v23 = vld [vmem:[%s5113_s4 + $0x590] sm:$0xff] }
 0x41b   : > { %v1769_v27 = vadd.f32 %v1768_v10, %v1620_v33  ;;  %v1667_v33 = vmul.f32 %v3995_v61, %v1331_v11  ;;  %v1753_v49 = vadd.f32 %v1752_v30, %v1603_v21  ;;  %v1780_v54 = vadd.f32 %v1779_v35, %v1557_v32  ;;  %v1222_v11 = vld [vmem:[%s5113_s4 + $0x218] sm:$0xff] }
 0x41c   : > { %v4156_v57 = vmul.f32 %v4023_v13, %v1363_v28  ;;  %v1526_v59 = vmul.f32 %v3954_v31, %v1190_v36  ;;  %v1792_v60 = vadd.f32 %v1510_v24, %v1494_v42  ;;  %v1589_v9 = vmul.f32 %v3999_v63, %v1253_v40  ;;  %v1238_v28 = vld [vmem:[%s5113_s4 + $0x298] sm:$0xff] }
 0x41d   : > { %v1770_v43 = vadd.f32 %v1769_v27, %v1636_v34  ;;  %v4159_v34 = vmul.f32 %v4025_v14, %v1379_v29  ;;  %v1754_v7 = vadd.f32 %v1753_v49, %v1619_v16  ;;  %v1781_v10 = vadd.f32 %v1780_v54, %v1573_v51  ;;  %v1159_v29 = vld [vmem:[%s5113_s4 + $0x20] sm:$0xff] }
 0x41e   : > { %v4176_v17 = vmul.f32 %v4027_v15, %v1395_v44  ;;  %v1605_v18 = vmul.f32 %v4001_v0, %v1269_v50  ;;  %v1542_v19 = vmul.f32 %v3963_v38, %v1206_v55  ;;  %v1793_v20 = vadd.f32 %v1792_v60, %v1526_v59  ;;  %v1254_v44 = vld [vmem:[%s5113_s4 + $0x318] sm:$0xff]  ;;  %v1191_v49 = vld [vmem:[%s5113_s4 + $0x120] sm:$0xff]  ;;  %v1365_v50 = vld [vmem:[%s5113_s4 + $0x690] sm:$0xff] }
 0x41f   : > { %v1771_v1 = vadd.f32 %v1770_v43, %v1652_v45  ;;  %v1317_v45 = vld [vmem:[%s5113_s4 + $0x510] sm:$0xff]  ;;  %v1755_v16 = vadd.f32 %v1754_v7, %v1635_v22  ;;  %v1621_v24 = vmul.f32 %v3966_v41, %v1285_v58  ;;  %v1782_v27 = vadd.f32 %v1781_v10, %v1589_v9  ;;  %v1207_v7 = vld [vmem:[%s5113_s4 + $0x1a0] sm:$0xff] }
 0x420   : > { %v1637_v22 = vmul.f32 %v3978_v52, %v1301_v8  ;;  %v1558_v30 = vmul.f32 %v3974_v46, %v1222_v11  ;;  %v1794_v32 = vadd.f32 %v1793_v20, %v1542_v19  ;;  %v1511_v35 = vmul.f32 %v3949_v26, %v1175_v12  ;;  %v1381_v8 = vld [vmem:[%s5113_s4 + $0x710] sm:$0xff]  ;;  %v1286_v19 = vld [vmem:[%s5113_s4 + $0x418] sm:$0xff]  ;;  %v1223_v20 = vld [vmem:[%s5113_s4 + $0x220] sm:$0xff] }
 0x421   : > { %v1772_v21 = vadd.f32 %v1771_v1, %v4073_v47  ;;  %v1349_v47 = vld [vmem:[%s5113_s4 + $0x610] sm:$0xff]  ;;  %v1756_v40 = vadd.f32 %v1755_v16, %v1651_v37  ;;  %v1653_v42 = vmul.f32 %v3988_v56, %v1317_v45  ;;  %v1783_v43 = vadd.f32 %v1782_v27, %v1605_v18  ;;  %v1270_v1 = vld [vmem:[%s5113_s4 + $0x398] sm:$0xff] }
 0x422   : > { %v1669_v51 = vmul.f32 %v3995_v61, %v1333_v23  ;;  %v1795_v37 = vadd.f32 %v1794_v32, %v1558_v30  ;;  %v1495_v54 = vmul.f32 %v3947_v25, %v1159_v29  ;;  %v1685_v59 = vmul.f32 %v3997_v62, %v1349_v47  ;;  %v1239_v30 = vld [vmem:[%s5113_s4 + $0x2a0] sm:$0xff]  ;;  %v1318_v32 = vld [vmem:[%s5113_s4 + $0x518] sm:$0xff] }
 0x423   : > { %v1773_v36 = vadd.f32 %v1772_v21, %v4076_v48  ;;  %v1574_v48 = vmul.f32 %v3980_v53, %v1238_v28  ;;  %v1757_v58 = vadd.f32 %v1756_v40, %v1667_v33  ;;  %v1784_v60 = vadd.f32 %v1783_v43, %v1621_v24  ;;  %v1397_v21 = vld [vmem:[%s5113_s4 + $0x790] sm:$0xff]  ;;  %v1176_v24 = vld [vmem:[%s5113_s4 + $0xa8] sm:$0xff] }
 0x424   : > { %v1590_v9 = vmul.f32 %v3999_v63, %v1254_v44  ;;  %v1807_v33 = vadd.f32 %v1511_v35, %v1495_v54  ;;  %v1701_v45 = vmul.f32 %v4023_v13, %v1365_v50  ;;  %v1606_v16 = vmul.f32 %v4001_v0, %v1270_v1  ;;  %v1160_v40 = vld [vmem:[%s5113_s4 + $0x28] sm:$0xff]  ;;  %v1255_v50 = vld [vmem:[%s5113_s4 + $0x320] sm:$0xff] }
 0x425   : > { %v1774_v55 = vadd.f32 %v1773_v36, %v4096_v3  ;;  %v1796_v10 = vadd.f32 %v1795_v37, %v1574_v48  ;;  %v1527_v3 = vmul.f32 %v3954_v31, %v1191_v49  ;;  %v1758_v12 = vadd.f32 %v1757_v58, %v1683_v39  ;;  %v1334_v49 = vld [vmem:[%s5113_s4 + $0x598] sm:$0xff]  ;;  %v1192_v58 = vld [vmem:[%s5113_s4 + $0x128] sm:$0xff] }
 0x426   : > { %v1785_v18 = vadd.f32 %v1784_v60, %v1637_v22  ;;  %v1717_v29 = vmul.f32 %v4025_v14, %v1381_v8  ;;  %v1302_v22 = vld [vmem:[%s5113_s4 + $0x498] sm:$0xff]  ;;  %v1622_v35 = vmul.f32 %v3966_v41, %v1286_v19  ;;  %v1733_v43 = vmul.f32 %v4027_v15, %v1397_v21 }
 0x427   : > { %v1775_v11 = vadd.f32 %v1774_v55, %v4099_v5  ;;  %v1797_v23 = vadd.f32 %v1796_v10, %v1590_v9  ;;  %v1543_v5 = vmul.f32 %v3963_v38, %v1207_v7  ;;  %v1808_v39 = vadd.f32 %v1807_v33, %v1527_v3  ;;  %v1350_v37 = vld [vmem:[%s5113_s4 + $0x618] sm:$0xff]  ;;  %v1271_v9 = vld [vmem:[%s5113_s4 + $0x3a0] sm:$0xff] }
 0x428   : > { %v1759_v28 = vadd.f32 %v1758_v12, %v4156_v57  ;;  %v1786_v47 = vadd.f32 %v1785_v18, %v1653_v42  ;;  %v1559_v57 = vmul.f32 %v3974_v46, %v1223_v20  ;;  %v1512_v48 = vmul.f32 %v3949_v26, %v1176_v24  ;;  %v1366_v7 = vld [vmem:[%s5113_s4 + $0x698] sm:$0xff]  ;;  %v1208_v12 = vld [vmem:[%s5113_s4 + $0x1a8] sm:$0xff]  ;;  %v1287_v20 = vld [vmem:[%s5113_s4 + $0x420] sm:$0xff] }
 0x429   : > { %v1776_v27 = vadd.f32 %v1775_v11, %v4102_v6  ;;  %v1798_v6 = vadd.f32 %v1797_v23, %v1606_v16  ;;  %v1809_v36 = vadd.f32 %v1808_v39, %v1543_v5  ;;  %v1638_v54 = vmul.f32 %v3978_v52, %v1302_v22  ;;  %v1382_v3 = vld [vmem:[%s5113_s4 + $0x718] sm:$0xff]  ;;  %v1177_v23 = vld [vmem:[%s5113_s4 + $0xb0] sm:$0xff] }
 0x42a   : > { %v1760_v42 = vadd.f32 %v1759_v28, %v4159_v34  ;;  %v1787_v44 = vadd.f32 %v1786_v47, %v1669_v51  ;;  %v1575_v55 = vmul.f32 %v3980_v53, %v1239_v30  ;;  %v1654_v8 = vmul.f32 %v3988_v56, %v1318_v32  ;;  %v1398_v5 = vld [vmem:[%s5113_s4 + $0x798] sm:$0xff]  ;;  %v1224_v28 = vld [vmem:[%s5113_s4 + $0x228] sm:$0xff]  ;;  %v1303_v30 = vld [vmem:[%s5113_s4 + $0x4a0] sm:$0xff] }
 0x42b   : > { %1989 = vadd.xlane.f32.xlu1 %v1776_v27  ;;  %v1799_v34 = vadd.f32 %v1798_v6, %v1622_v35  ;;  %v1810_v51 = vadd.f32 %v1809_v36, %v1559_v57  ;;  %v1496_v10 = vmul.f32 %v3947_v25, %v1160_v40  ;;  %v1670_v33 = vmul.f32 %v3995_v61, %v1334_v49  ;;  %v1161_v6 = vld [vmem:[%s5113_s4 + $0x30] sm:$0xff]  ;;  %v1319_v36 = vld [vmem:[%s5113_s4 + $0x520] sm:$0xff] }
 0x42c   : > { %v1761_v60 = vadd.f32 %v1760_v42, %v4176_v17  ;;  %v1788_v1 = vadd.f32 %v1787_v44, %v1685_v59  ;;  %v1591_v59 = vmul.f32 %v3999_v63, %v1255_v50  ;;  %v1686_v19 = vmul.f32 %v3997_v62, %v1350_v37  ;;  %v1240_v44 = vld [vmem:[%s5113_s4 + $0x2a8] sm:$0xff] }
 0x42d   : > { %v1800_v17 = vadd.f32 %v1799_v34, %v1638_v54  ;;  %v1811_v11 = vadd.f32 %v1810_v51, %v1575_v55  ;;  %v1528_v21 = vmul.f32 %v3954_v31, %v1192_v58  ;;  %v1822_v16 = vadd.f32 %v1512_v48, %v1496_v10  ;;  %v1193_v34 = vld [vmem:[%s5113_s4 + $0x130] sm:$0xff]  ;;  %v1351_v51 = vld [vmem:[%s5113_s4 + $0x620] sm:$0xff] }
 0x42e   : > { %1987 = vadd.xlane.f32.xlu0 %v1761_v60  ;;  %v1789_v18 = vadd.f32 %v1788_v1, %v1701_v45  ;;  %v1702_v39 = vmul.f32 %v4023_v13, %v1366_v7  ;;  %v1607_v24 = vmul.f32 %v4001_v0, %v1271_v9  ;;  %v1718_v22 = vmul.f32 %v4025_v14, %v1382_v3  ;;  %v1367_v58 = vld [vmem:[%s5113_s4 + $0x6a0] sm:$0xff]  ;;  %v1256_v1 = vld [vmem:[%s5113_s4 + $0x328] sm:$0xff] }
 0x42f   : > { %v1801_v45 = vadd.f32 %v1800_v17, %v1654_v8  ;;  %v1812_v27 = vadd.f32 %v1811_v11, %v1591_v59  ;;  %v1544_v32 = vmul.f32 %v3963_v38, %v1208_v12  ;;  %v1823_v35 = vadd.f32 %v1822_v16, %v1528_v21  ;;  %v1383_v59 = vld [vmem:[%s5113_s4 + $0x720] sm:$0xff]  ;;  %v1272_v12 = vld [vmem:[%s5113_s4 + $0x3a8] sm:$0xff] }
 0x430   : > { %v1790_v47 = vadd.f32 %v1789_v18, %v1717_v29  ;;  %v1335_v29 = vld [vmem:[%s5113_s4 + $0x5a0] sm:$0xff]  ;;  %v1623_v40 = vmul.f32 %v3966_v41, %v1287_v20  ;;  %v1513_v49 = vmul.f32 %v3949_v26, %v1177_v23  ;;  %v1734_v48 = vmul.f32 %v4027_v15, %v1398_v5  ;;  %v1225_v18 = vld [vmem:[%s5113_s4 + $0x230] sm:$0xff] }
 0x431   : > { %v1802_v57 = vadd.f32 %v1801_v45, %v1670_v33  ;;  %v1813_v42 = vadd.f32 %v1812_v27, %v1607_v24  ;;  %v1560_v37 = vmul.f32 %v3974_v46, %v1224_v28  ;;  %v1824_v54 = vadd.f32 %v1823_v35, %v1544_v32  ;;  %v1209_v33 = vld [vmem:[%s5113_s4 + $0x1b0] sm:$0xff]  ;;  %v1399_v24 = vld [vmem:[%s5113_s4 + $0x7a0] sm:$0xff]  ;;  %v1288_v28 = vld [vmem:[%s5113_s4 + $0x428] sm:$0xff] }
 0x432   : > { %v1791_v50 = vadd.f32 %v1790_v47, %v1733_v43  ;;  %v1639_v43 = vmul.f32 %v3978_v52, %v1303_v30  ;;  %v1497_v7 = vmul.f32 %v3947_v25, %v1161_v6  ;;  %v1655_v8 = vmul.f32 %v3988_v56, %v1319_v36  ;;  %v1304_v47 = vld [vmem:[%s5113_s4 + $0x4a8] sm:$0xff] }
 0x433   : > { %v1803_v55 = vadd.f32 %v1802_v57, %v1686_v19  ;;  %v1814_v60 = vadd.f32 %v1813_v42, %v1623_v40  ;;  %v1671_v9 = vmul.f32 %v3995_v61, %v1335_v29  ;;  %v1576_v10 = vmul.f32 %v3980_v53, %v1240_v44  ;;  %v1241_v57 = vld [vmem:[%s5113_s4 + $0x2b0] sm:$0xff]  ;;  %v1162_v29 = vld [vmem:[%s5113_s4 + $0x38] sm:$0xff]  ;;  %v1320_v44 = vld [vmem:[%s5113_s4 + $0x528] sm:$0xff] }
 0x434   : > { %1991 = vadd.xlane.f32.xlu1 %v1791_v50  ;;  %v1825_v3 = vadd.f32 %v1824_v54, %v1560_v37  ;;  %v1529_v19 = vmul.f32 %v3954_v31, %v1193_v34  ;;  %v1837_v20 = vadd.f32 %v1513_v49, %v1497_v7  ;;  %v1687_v21 = vmul.f32 %v3997_v62, %v1351_v51  ;;  %v1336_v49 = vld [vmem:[%s5113_s4 + $0x5a8] sm:$0xff]  ;;  %v1257_v50 = vld [vmem:[%s5113_s4 + $0x330] sm:$0xff] }
 0x435   : > { %v1804_v17 = vadd.f32 %v1803_v55, %v1702_v39  ;;  %v1815_v11 = vadd.f32 %v1814_v60, %v1639_v43  ;;  %v1703_v16 = vmul.f32 %v4023_v13, %v1367_v58  ;;  %v1592_v23 = vmul.f32 %v3999_v63, %v1256_v1  ;;  %v1178_v39 = vld [vmem:[%s5113_s4 + $0xb8] sm:$0xff]  ;;  %v1352_v60 = vld [vmem:[%s5113_s4 + $0x628] sm:$0xff]  ;;  %v1273_v7 = vld [vmem:[%s5113_s4 + $0x3b0] sm:$0xff] }
 0x436   : > { %v1826_v5 = vadd.f32 %v1825_v3, %v1576_v10  ;;  %v1545_v30 = vmul.f32 %v3963_v38, %v1209_v33  ;;  %v1838_v32 = vadd.f32 %v1837_v20, %v1529_v19  ;;  %v1719_v35 = vmul.f32 %v4025_v14, %v1383_v59  ;;  %v1194_v58 = vld [vmem:[%s5113_s4 + $0x138] sm:$0xff]  ;;  %v1368_v1 = vld [vmem:[%s5113_s4 + $0x6a8] sm:$0xff]  ;;  %v1289_v19 = vld [vmem:[%s5113_s4 + $0x430] sm:$0xff] }
 0x437   : > { %v1805_v45 = vadd.f32 %v1804_v17, %v1718_v22  ;;  %v1816_v27 = vadd.f32 %v1815_v11, %v1655_v8  ;;  %v1608_v22 = vmul.f32 %v4001_v0, %v1272_v12  ;;  %v1561_v36 = vmul.f32 %v3974_v46, %v1225_v18  ;;  %v1210_v11 = vld [vmem:[%s5113_s4 + $0x1b8] sm:$0xff]  ;;  %v1384_v18 = vld [vmem:[%s5113_s4 + $0x728] sm:$0xff] }
 0x438   : > { %v1827_v6 = vadd.f32 %v1826_v5, %v1592_v23  ;;  %v1839_v37 = vadd.f32 %v1838_v32, %v1545_v30  ;;  %v1514_v54 = vmul.f32 %v3949_v26, %v1178_v39  ;;  %v1735_v34 = vmul.f32 %v4027_v15, %v1399_v24  ;;  %v1179_v5 = vld [vmem:[%s5113_s4 + $0xc0] sm:$0xff]  ;;  %v1305_v30 = vld [vmem:[%s5113_s4 + $0x4b0] sm:$0xff] }
 0x439   : > { %v1806_v40 = vadd.f32 %v1805_v45, %v1734_v48  ;;  %v1817_v42 = vadd.f32 %v1816_v27, %v1671_v9  ;;  %v1624_v48 = vmul.f32 %v3966_v41, %v1288_v28  ;;  %v1640_v55 = vmul.f32 %v3978_v52, %v1304_v47  ;;  %v1226_v27 = vld [vmem:[%s5113_s4 + $0x238] sm:$0xff]  ;;  %v1400_v47 = vld [vmem:[%s5113_s4 + $0x7a8] sm:$0xff] }
 0x43a   : > { %v1828_v51 = vadd.f32 %v1827_v6, %v1608_v22  ;;  %v1577_v8 = vmul.f32 %v3980_v53, %v1241_v57  ;;  %v1840_v9 = vadd.f32 %v1839_v37, %v1561_v36  ;;  %v1498_v10 = vmul.f32 %v3947_v25, %v1162_v29  ;;  %v1163_v57 = vld [vmem:[%s5113_s4 + $0x40] sm:$0xff] }
 0x43b   : > { %1993 = vadd.xlane.f32.xlu0 %v1806_v40  ;;  %v1818_v43 = vadd.f32 %v1817_v42, %v1687_v21  ;;  %v1656_v3 = vmul.f32 %v3988_v56, %v1320_v44  ;;  %v1672_v33 = vmul.f32 %v3995_v61, %v1336_v49  ;;  %v1593_v59 = vmul.f32 %v3999_v63, %v1257_v50  ;;  %v1242_v42 = vld [vmem:[%s5113_s4 + $0x2b8] sm:$0xff]  ;;  %v1337_v50 = vld [vmem:[%s5113_s4 + $0x5b0] sm:$0xff] }
 0x43c   : > { %v1829_v17 = vadd.f32 %v1828_v51, %v1624_v48  ;;  %v1841_v20 = vadd.f32 %v1840_v9, %v1577_v8  ;;  %v1530_v21 = vmul.f32 %v3954_v31, %v1194_v58  ;;  %v1852_v23 = vadd.f32 %v1514_v54, %v1498_v10 }
 0x43d   : > { %v1819_v12 = vadd.f32 %v1818_v43, %v1703_v16  ;;  %v1688_v39 = vmul.f32 %v3997_v62, %v1352_v60  ;;  %v1704_v16 = vmul.f32 %v4023_v13, %v1368_v1  ;;  %v1609_v24 = vmul.f32 %v4001_v0, %v1273_v7  ;;  %v1353_v43 = vld [vmem:[%s5113_s4 + $0x630] sm:$0xff]  ;;  %v1258_v60 = vld [vmem:[%s5113_s4 + $0x338] sm:$0xff] }
 0x43e   : > { %v1830_v45 = vadd.f32 %v1829_v17, %v1640_v55  ;;  %v1842_v32 = vadd.f32 %v1841_v20, %v1593_v59  ;;  %v1546_v22 = vmul.f32 %v3963_v38, %v1210_v11  ;;  %v1853_v6 = vadd.f32 %v1852_v23, %v1530_v21  ;;  %v1195_v55 = vld [vmem:[%s5113_s4 + $0x140] sm:$0xff]  ;;  %v1369_v7 = vld [vmem:[%s5113_s4 + $0x6b0] sm:$0xff] }
 0x43f   : > { %v1820_v28 = vadd.f32 %v1819_v12, %v1719_v35  ;;  %v1720_v36 = vmul.f32 %v4025_v14, %v1384_v18  ;;  %v1321_v35 = vld [vmem:[%s5113_s4 + $0x530] sm:$0xff]  ;;  %v1625_v40 = vmul.f32 %v3966_v41, %v1289_v19  ;;  %v1515_v44 = vmul.f32 %v3949_v26, %v1179_v5  ;;  %v1274_v12 = vld [vmem:[%s5113_s4 + $0x3b8] sm:$0xff] }
 0x440   : > { %v1831_v29 = vadd.f32 %v1830_v45, %v1656_v3  ;;  %v1843_v37 = vadd.f32 %v1842_v32, %v1609_v24  ;;  %v1562_v54 = vmul.f32 %v3974_v46, %v1226_v27  ;;  %v1854_v48 = vadd.f32 %v1853_v6, %v1546_v22  ;;  %v1385_v59 = vld [vmem:[%s5113_s4 + $0x730] sm:$0xff]  ;;  %v1180_v45 = vld [vmem:[%s5113_s4 + $0xc8] sm:$0xff] }
 0x441   : > { %v1821_v49 = vadd.f32 %v1820_v28, %v1735_v34  ;;  %v1736_v51 = vmul.f32 %v4027_v15, %v1400_v47  ;;  %v1641_v34 = vmul.f32 %v3978_v52, %v1305_v30  ;;  %v1499_v1 = vmul.f32 %v3947_v25, %v1163_v57  ;;  %v1401_v27 = vld [vmem:[%s5113_s4 + $0x7b0] sm:$0xff]  ;;  %v1290_v47 = vld [vmem:[%s5113_s4 + $0x438] sm:$0xff] }
 0x442   : > { %v1832_v58 = vadd.f32 %v1831_v29, %v1672_v33  ;;  %v1657_v8 = vmul.f32 %v3988_v56, %v1321_v35  ;;  %v1844_v9 = vadd.f32 %v1843_v37, %v1625_v40  ;;  %v1578_v10 = vmul.f32 %v3980_v53, %v1242_v42  ;;  %v1211_v33 = vld [vmem:[%s5113_s4 + $0x1c0] sm:$0xff]  ;;  %v1164_v35 = vld [vmem:[%s5113_s4 + $0x48] sm:$0xff]  ;;  %v1306_v42 = vld [vmem:[%s5113_s4 + $0x4b8] sm:$0xff] }
 0x443   : > { %1995 = vadd.xlane.f32.xlu1 %v1821_v49  ;;  %v1855_v3 = vadd.f32 %v1854_v48, %v1562_v54  ;;  %v1673_v11 = vmul.f32 %v3995_v61, %v1337_v50  ;;  %v1531_v18 = vmul.f32 %v3954_v31, %v1195_v55  ;;  %v1867_v19 = vadd.f32 %v1515_v44, %v1499_v1  ;;  %v1322_v44 = vld [vmem:[%s5113_s4 + $0x538] sm:$0xff] }
 0x444   : > { %v1833_v17 = vadd.f32 %v1832_v58, %v1688_v39  ;;  %v1689_v20 = vmul.f32 %v3997_v62, %v1353_v43  ;;  %v1845_v21 = vadd.f32 %v1844_v9, %v1641_v34  ;;  %v1594_v23 = vmul.f32 %v3999_v63, %v1258_v60  ;;  %v1227_v39 = vld [vmem:[%s5113_s4 + $0x240] sm:$0xff]  ;;  %v1196_v43 = vld [vmem:[%s5113_s4 + $0x148] sm:$0xff]  ;;  %v1338_v60 = vld [vmem:[%s5113_s4 + $0x5b8] sm:$0xff] }
 0x445   : > { %v1856_v5 = vadd.f32 %v1855_v3, %v1578_v10  ;;  %v1705_v28 = vmul.f32 %v4023_v13, %v1369_v7  ;;  %v1547_v30 = vmul.f32 %v3963_v38, %v1211_v33  ;;  %v1868_v32 = vadd.f32 %v1867_v19, %v1531_v18  ;;  %v1354_v1 = vld [vmem:[%s5113_s4 + $0x638] sm:$0xff] }
 0x446   : > { %v1834_v24 = vadd.f32 %v1833_v17, %v1704_v16  ;;  %v1721_v22 = vmul.f32 %v4025_v14, %v1385_v59  ;;  %v1846_v6 = vadd.f32 %v1845_v21, %v1657_v8  ;;  %v1610_v57 = vmul.f32 %v4001_v0, %v1274_v12  ;;  %v1243_v16 = vld [vmem:[%s5113_s4 + $0x2c0] sm:$0xff]  ;;  %v1212_v59 = vld [vmem:[%s5113_s4 + $0x1c8] sm:$0xff] }
 0x447   : > { %v1857_v29 = vadd.f32 %v1856_v5, %v1594_v23  ;;  %v1563_v49 = vmul.f32 %v3974_v46, %v1227_v39  ;;  %v1869_v50 = vadd.f32 %v1868_v32, %v1547_v30  ;;  %v1516_v37 = vmul.f32 %v3949_v26, %v1180_v45  ;;  %v1291_v12 = vld [vmem:[%s5113_s4 + $0x440] sm:$0xff] }
 0x448   : > { %v1835_v40 = vadd.f32 %v1834_v24, %v1720_v36  ;;  %v1737_v54 = vmul.f32 %v4027_v15, %v1401_v27  ;;  %v1847_v48 = vadd.f32 %v1846_v6, %v1673_v11  ;;  %v1626_v55 = vmul.f32 %v3966_v41, %v1290_v47  ;;  %v1259_v36 = vld [vmem:[%s5113_s4 + $0x340] sm:$0xff]  ;;  %v1370_v11 = vld [vmem:[%s5113_s4 + $0x6b8] sm:$0xff]  ;;  %v1228_v24 = vld [vmem:[%s5113_s4 + $0x248] sm:$0xff] }
 0x449   : > { %v1858_v58 = vadd.f32 %v1857_v29, %v1610_v57  ;;  %v1579_v7 = vmul.f32 %v3980_v53, %v1243_v16  ;;  %v1870_v8 = vadd.f32 %v1869_v50, %v1563_v49  ;;  %v1500_v9 = vmul.f32 %v3947_v25, %v1164_v35  ;;  %v1181_v27 = vld [vmem:[%s5113_s4 + $0xd0] sm:$0xff]  ;;  %v1386_v47 = vld [vmem:[%s5113_s4 + $0x738] sm:$0xff] }
 0x44a   : > { %v1836_v34 = vadd.f32 %v1835_v40, %v1736_v51  ;;  %v1848_v10 = vadd.f32 %v1847_v48, %v1689_v20  ;;  %v1642_v3 = vmul.f32 %v3978_v52, %v1306_v42  ;;  %v1658_v33 = vmul.f32 %v3988_v56, %v1322_v44  ;;  %v1275_v51 = vld [vmem:[%s5113_s4 + $0x3c0] sm:$0xff]  ;;  %v1244_v42 = vld [vmem:[%s5113_s4 + $0x2c8] sm:$0xff]  ;;  %v1165_v44 = vld [vmem:[%s5113_s4 + $0x50] sm:$0xff] }
 0x44b   : > { %v1859_v17 = vadd.f32 %v1858_v58, %v1626_v55  ;;  %v1595_v18 = vmul.f32 %v3999_v63, %v1259_v36  ;;  %v1871_v19 = vadd.f32 %v1870_v8, %v1579_v7  ;;  %v1532_v20 = vmul.f32 %v3954_v31, %v1196_v43  ;;  %v1402_v49 = vld [vmem:[%s5113_s4 + $0x7b8] sm:$0xff]  ;;  %v1339_v7 = vld [vmem:[%s5113_s4 + $0x5c0] sm:$0xff] }
 0x44c   : > { %1997 = vadd.xlane.f32.xlu0 %v1836_v34  ;;  %v1882_v21 = vadd.f32 %v1516_v37, %v1500_v9  ;;  %v1849_v23 = vadd.f32 %v1848_v10, %v1705_v28  ;;  %v1674_v5 = vmul.f32 %v3995_v61, %v1338_v60  ;;  %v1690_v39 = vmul.f32 %v3997_v62, %v1354_v1  ;;  %v1307_v28 = vld [vmem:[%s5113_s4 + $0x4c0] sm:$0xff]  ;;  %v1260_v37 = vld [vmem:[%s5113_s4 + $0x348] sm:$0xff]  ;;  %v1197_v1 = vld [vmem:[%s5113_s4 + $0x150] sm:$0xff] }
 0x44d   : > { %v1860_v45 = vadd.f32 %v1859_v17, %v1642_v3  ;;  %v1611_v30 = vmul.f32 %v4001_v0, %v1275_v51  ;;  %v1872_v32 = vadd.f32 %v1871_v19, %v1595_v18  ;;  %v1548_v6 = vmul.f32 %v3963_v38, %v1212_v59  ;;  %v1355_v8 = vld [vmem:[%s5113_s4 + $0x640] sm:$0xff] }
 0x44e   : > { %v1883_v57 = vadd.f32 %v1882_v21, %v1532_v20  ;;  %v1850_v29 = vadd.f32 %v1849_v23, %v1721_v22  ;;  %v1706_v16 = vmul.f32 %v4023_v13, %v1370_v11  ;;  %v1627_v40 = vmul.f32 %v3966_v41, %v1291_v12  ;;  %v1323_v22 = vld [vmem:[%s5113_s4 + $0x540] sm:$0xff]  ;;  %v1213_v12 = vld [vmem:[%s5113_s4 + $0x1d0] sm:$0xff]  ;;  %v1292_v20 = vld [vmem:[%s5113_s4 + $0x448] sm:$0xff] }
 0x44f   : > { %v1861_v35 = vadd.f32 %v1860_v45, %v1658_v33  ;;  %v1873_v50 = vadd.f32 %v1872_v32, %v1611_v30  ;;  %v1564_v48 = vmul.f32 %v3974_v46, %v1228_v24  ;;  %v1517_v58 = vmul.f32 %v3949_v26, %v1181_v27  ;;  %v1371_v18 = vld [vmem:[%s5113_s4 + $0x6c0] sm:$0xff]  ;;  %v1229_v23 = vld [vmem:[%s5113_s4 + $0x250] sm:$0xff] }
 0x450   : > { %v1884_v55 = vadd.f32 %v1883_v57, %v1548_v6  ;;  %v1851_v36 = vadd.f32 %v1850_v29, %v1737_v54  ;;  %v1722_v43 = vmul.f32 %v4025_v14, %v1386_v47  ;;  %v1643_v60 = vmul.f32 %v3978_v52, %v1307_v28  ;;  %v1276_v54 = vld [vmem:[%s5113_s4 + $0x3c8] sm:$0xff]  ;;  %v1182_v28 = vld [vmem:[%s5113_s4 + $0xd8] sm:$0xff]  ;;  %v1387_v30 = vld [vmem:[%s5113_s4 + $0x740] sm:$0xff] }
 0x451   : > { %v1862_v34 = vadd.f32 %v1861_v35, %v1674_v5  ;;  %v1874_v9 = vadd.f32 %v1873_v50, %v1627_v40  ;;  %v1580_v10 = vmul.f32 %v3980_v53, %v1244_v42  ;;  %v1501_v33 = vmul.f32 %v3947_v25, %v1165_v44  ;;  %v1308_v6 = vld [vmem:[%s5113_s4 + $0x4c8] sm:$0xff]  ;;  %v1245_v29 = vld [vmem:[%s5113_s4 + $0x2d0] sm:$0xff]  ;;  %v1403_v42 = vld [vmem:[%s5113_s4 + $0x7c0] sm:$0xff] }
 0x452   : > { %v1885_v3 = vadd.f32 %v1884_v55, %v1564_v48  ;;  %1999 = vadd.xlane.f32.xlu1 %v1851_v36  ;;  %v1738_v17 = vmul.f32 %v4027_v15, %v1402_v49  ;;  %v1659_v59 = vmul.f32 %v3988_v56, %v1323_v22  ;;  %v1596_v11 = vmul.f32 %v3999_v63, %v1260_v37  ;;  %v1166_v50 = vld [vmem:[%s5113_s4 + $0x58] sm:$0xff]  ;;  %v1324_v48 = vld [vmem:[%s5113_s4 + $0x548] sm:$0xff] }
 0x453   : > { %v1863_v51 = vadd.f32 %v1862_v34, %v1690_v39  ;;  %v1875_v19 = vadd.f32 %v1874_v9, %v1643_v60  ;;  %v1533_v5 = vmul.f32 %v3954_v31, %v1197_v1  ;;  %v1897_v39 = vadd.f32 %v1517_v58, %v1501_v33  ;;  %v1261_v58 = vld [vmem:[%s5113_s4 + $0x350] sm:$0xff] }
 0x454   : > { %v1886_v21 = vadd.f32 %v1885_v3, %v1580_v10  ;;  %v1675_v24 = vmul.f32 %v3995_v61, %v1339_v7  ;;  %v1691_v27 = vmul.f32 %v3997_v62, %v1355_v8  ;;  %v1612_v47 = vmul.f32 %v4001_v0, %v1276_v54  ;;  %v1356_v7 = vld [vmem:[%s5113_s4 + $0x648] sm:$0xff]  ;;  %v1277_v33 = vld [vmem:[%s5113_s4 + $0x3d0] sm:$0xff] }
 0x455   : > { %v1864_v45 = vadd.f32 %v1863_v51, %v1706_v16  ;;  %v1876_v32 = vadd.f32 %v1875_v19, %v1659_v59  ;;  %v1549_v16 = vmul.f32 %v3963_v38, %v1213_v12  ;;  %v1898_v35 = vadd.f32 %v1897_v39, %v1533_v5  ;;  %v1340_v10 = vld [vmem:[%s5113_s4 + $0x5c8] sm:$0xff]  ;;  %v1214_v51 = vld [vmem:[%s5113_s4 + $0x1d8] sm:$0xff]  ;;  %v1293_v5 = vld [vmem:[%s5113_s4 + $0x450] sm:$0xff] }
 0x456   : > { %v1887_v57 = vadd.f32 %v1886_v21, %v1596_v11  ;;  %v1707_v44 = vmul.f32 %v4023_v13, %v1371_v18  ;;  %v1628_v49 = vmul.f32 %v3966_v41, %v1292_v20  ;;  %v1565_v22 = vmul.f32 %v3974_v46, %v1229_v23  ;;  %v1372_v12 = vld [vmem:[%s5113_s4 + $0x6c8] sm:$0xff] }
 0x457   : > { %v1865_v40 = vadd.f32 %v1864_v45, %v1722_v43  ;;  %v1877_v37 = vadd.f32 %v1876_v32, %v1675_v24  ;;  %v1899_v36 = vadd.f32 %v1898_v35, %v1549_v16  ;;  %v1198_v43 = vld [vmem:[%s5113_s4 + $0x158] sm:$0xff]  ;;  %v1518_v34 = vmul.f32 %v3949_v26, %v1182_v28  ;;  %v1309_v35 = vld [vmem:[%s5113_s4 + $0x4d0] sm:$0xff] }
 0x458   : > { %v1888_v55 = vadd.f32 %v1887_v57, %v1612_v47  ;;  %v1723_v1 = vmul.f32 %v4025_v14, %v1387_v30  ;;  %v1644_v8 = vmul.f32 %v3978_v52, %v1308_v6  ;;  %v1581_v9 = vmul.f32 %v3980_v53, %v1245_v29  ;;  %v1230_v45 = vld [vmem:[%s5113_s4 + $0x258] sm:$0xff]  ;;  %v1388_v47 = vld [vmem:[%s5113_s4 + $0x748] sm:$0xff] }
 0x459   : > { %v1866_v60 = vadd.f32 %v1865_v40, %v1738_v17  ;;  %v1878_v54 = vadd.f32 %v1877_v37, %v1691_v27  ;;  %v1900_v17 = vadd.f32 %v1899_v36, %v1565_v22  ;;  %v1502_v59 = vmul.f32 %v3947_v25, %v1166_v50  ;;  %v1183_v27 = vld [vmem:[%s5113_s4 + $0xe0] sm:$0xff]  ;;  %v1404_v29 = vld [vmem:[%s5113_s4 + $0x7c8] sm:$0xff]  ;;  %v1246_v50 = vld [vmem:[%s5113_s4 + $0x2d8] sm:$0xff] }
 0x45a   : > { %v1889_v3 = vadd.f32 %v1888_v55, %v1628_v49  ;;  %v1739_v11 = vmul.f32 %v4027_v15, %v1403_v42  ;;  %v1660_v18 = vmul.f32 %v3988_v56, %v1324_v48  ;;  %v1597_v19 = vmul.f32 %v3999_v63, %v1261_v58  ;;  %v1325_v36 = vld [vmem:[%s5113_s4 + $0x550] sm:$0xff] }
 0x45b   : > { %2001 = vadd.xlane.f32.xlu0 %v1866_v60  ;;  %v1534_v20 = vmul.f32 %v3954_v31, %v1198_v43  ;;  %v1879_v21 = vadd.f32 %v1878_v54, %v1707_v44  ;;  %v1901_v39 = vadd.f32 %v1900_v17, %v1581_v9  ;;  %v1912_v24 = vadd.f32 %v1518_v34, %v1502_v59  ;;  %v1167_v44 = vld [vmem:[%s5113_s4 + $0x60] sm:$0xff]  ;;  %v1341_v43 = vld [vmem:[%s5113_s4 + $0x5d0] sm:$0xff]  ;;  %v1262_v54 = vld [vmem:[%s5113_s4 + $0x358] sm:$0xff] }
 0x45c   : > { %v1890_v23 = vadd.f32 %v1889_v3, %v1644_v8  ;;  %v1676_v28 = vmul.f32 %v3995_v61, %v1340_v10  ;;  %v1692_v30 = vmul.f32 %v3997_v62, %v1356_v7  ;;  %v1613_v32 = vmul.f32 %v4001_v0, %v1277_v33  ;;  %v1357_v33 = vld [vmem:[%s5113_s4 + $0x650] sm:$0xff] }
 0x45d   : > { %v1550_v6 = vmul.f32 %v3963_v38, %v1214_v51  ;;  %v1880_v57 = vadd.f32 %v1879_v21, %v1723_v1  ;;  %v1902_v40 = vadd.f32 %v1901_v39, %v1597_v19  ;;  %v1913_v42 = vadd.f32 %v1912_v24, %v1534_v20  ;;  %v1199_v1 = vld [vmem:[%s5113_s4 + $0x160] sm:$0xff]  ;;  %v1373_v17 = vld [vmem:[%s5113_s4 + $0x6d0] sm:$0xff]  ;;  %v1278_v20 = vld [vmem:[%s5113_s4 + $0x3d8] sm:$0xff] }
 0x45e   : > { %v1891_v16 = vadd.f32 %v1890_v23, %v1660_v18  ;;  %v1708_v49 = vmul.f32 %v4023_v13, %v1372_v12  ;;  %v1629_v22 = vmul.f32 %v3966_v41, %v1293_v5  ;;  %v1566_v37 = vmul.f32 %v3974_v46, %v1230_v45  ;;  %v1215_v12 = vld [vmem:[%s5113_s4 + $0x1e0] sm:$0xff]  ;;  %v1389_v39 = vld [vmem:[%s5113_s4 + $0x750] sm:$0xff] }
 0x45f   : > { %v1519_v48 = vmul.f32 %v3949_v26, %v1183_v27  ;;  %v1881_v55 = vadd.f32 %v1880_v57, %v1739_v11  ;;  %v1903_v34 = vadd.f32 %v1902_v40, %v1613_v32  ;;  %v1914_v60 = vadd.f32 %v1913_v42, %v1550_v6  ;;  %v1294_v6 = vld [vmem:[%s5113_s4 + $0x458] sm:$0xff] }
 0x460   : > { %v1892_v58 = vadd.f32 %v1891_v16, %v1676_v28  ;;  %v1724_v7 = vmul.f32 %v4025_v14, %v1388_v47  ;;  %v1740_v8 = vmul.f32 %v4027_v15, %v1404_v29  ;;  %v1645_v9 = vmul.f32 %v3978_v52, %v1309_v35  ;;  %v1231_v47 = vld [vmem:[%s5113_s4 + $0x260] sm:$0xff]  ;;  %v1184_v28 = vld [vmem:[%s5113_s4 + $0xe8] sm:$0xff]  ;;  %v1405_v35 = vld [vmem:[%s5113_s4 + $0x7d0] sm:$0xff] }
 0x461   : > { %v1503_v10 = vmul.f32 %v3947_v25, %v1167_v44  ;;  %2003 = vadd.xlane.f32.xlu1 %v1881_v55  ;;  %v1904_v51 = vadd.f32 %v1903_v34, %v1629_v22  ;;  %v1582_v59 = vmul.f32 %v3980_v53, %v1246_v50  ;;  %v1915_v11 = vadd.f32 %v1914_v60, %v1566_v37  ;;  %v1168_v22 = vld [vmem:[%s5113_s4 + $0x68] sm:$0xff]  ;;  %v1310_v37 = vld [vmem:[%s5113_s4 + $0x4d8] sm:$0xff] }
 0x462   : > { %v1893_v3 = vadd.f32 %v1892_v58, %v1692_v30  ;;  %v1661_v18 = vmul.f32 %v3988_v56, %v1325_v36  ;;  %v1677_v19 = vmul.f32 %v3995_v61, %v1341_v43  ;;  %v1535_v21 = vmul.f32 %v3954_v31, %v1199_v1 }
 0x463   : > { %v1927_v23 = vadd.f32 %v1519_v48, %v1503_v10  ;;  %v1905_v45 = vadd.f32 %v1904_v51, %v1645_v9  ;;  %v1598_v24 = vmul.f32 %v3999_v63, %v1262_v54  ;;  %v1916_v27 = vadd.f32 %v1915_v11, %v1582_v59  ;;  %v1326_v48 = vld [vmem:[%s5113_s4 + $0x558] sm:$0xff]  ;;  %v1200_v9 = vld [vmem:[%s5113_s4 + $0x168] sm:$0xff] }
 0x464   : > { %v1894_v5 = vadd.f32 %v1893_v3, %v1708_v49  ;;  %v1693_v30 = vmul.f32 %v3997_v62, %v1357_v33  ;;  %v1709_v32 = vmul.f32 %v4023_v13, %v1373_v17  ;;  %v1551_v57 = vmul.f32 %v3963_v38, %v1215_v12  ;;  %v1247_v49 = vld [vmem:[%s5113_s4 + $0x2e0] sm:$0xff]  ;;  %v1342_v10 = vld [vmem:[%s5113_s4 + $0x5d8] sm:$0xff] }
 0x465   : > { %v1928_v29 = vadd.f32 %v1927_v23, %v1535_v21  ;;  %v1906_v40 = vadd.f32 %v1905_v45, %v1661_v18  ;;  %v1614_v42 = vmul.f32 %v4001_v0, %v1278_v20  ;;  %v1917_v44 = vadd.f32 %v1916_v27, %v1598_v24  ;;  %v1279_v18 = vld [vmem:[%s5113_s4 + $0x3e0] sm:$0xff]  ;;  %v1374_v20 = vld [vmem:[%s5113_s4 + $0x6d8] sm:$0xff] }
 0x466   : > { %v1895_v16 = vadd.f32 %v1894_v5, %v1724_v7  ;;  %v1725_v50 = vmul.f32 %v4025_v14, %v1389_v39  ;;  %v1567_v55 = vmul.f32 %v3974_v46, %v1231_v47  ;;  %v1520_v36 = vmul.f32 %v3949_v26, %v1184_v28  ;;  %v1263_v7 = vld [vmem:[%s5113_s4 + $0x360] sm:$0xff] }
 0x467   : > { %v1929_v58 = vadd.f32 %v1928_v29, %v1551_v57  ;;  %v1907_v34 = vadd.f32 %v1906_v40, %v1677_v19  ;;  %v1630_v60 = vmul.f32 %v3966_v41, %v1294_v6  ;;  %v1918_v1 = vadd.f32 %v1917_v44, %v1614_v42  ;;  %v1216_v19 = vld [vmem:[%s5113_s4 + $0x1e8] sm:$0xff]  ;;  %v1295_v21 = vld [vmem:[%s5113_s4 + $0x460] sm:$0xff]  ;;  %v1185_v6 = vld [vmem:[%s5113_s4 + $0xf0] sm:$0xff] }
 0x468   : > { %v1896_v43 = vadd.f32 %v1895_v16, %v1740_v8  ;;  %v1741_v54 = vmul.f32 %v4027_v15, %v1405_v35  ;;  %v1358_v8 = vld [vmem:[%s5113_s4 + $0x658] sm:$0xff]  ;;  %v1583_v3 = vmul.f32 %v3980_v53, %v1247_v49  ;;  %v1504_v17 = vmul.f32 %v3947_v25, %v1168_v22 }
 0x469   : > { %v1930_v33 = vadd.f32 %v1929_v58, %v1567_v55  ;;  %v1908_v51 = vadd.f32 %v1907_v34, %v1693_v30  ;;  %v1646_v59 = vmul.f32 %v3978_v52, %v1310_v37  ;;  %v1662_v11 = vmul.f32 %v3988_v56, %v1326_v48  ;;  %v1232_v30 = vld [vmem:[%s5113_s4 + $0x268] sm:$0xff]  ;;  %v1390_v57 = vld [vmem:[%s5113_s4 + $0x758] sm:$0xff]  ;;  %v1169_v48 = vld [vmem:[%s5113_s4 + $0x70] sm:$0xff] }
 0x46a   : > { %2005 = vadd.xlane.f32.xlu0 %v1896_v43  ;;  %v1919_v12 = vadd.f32 %v1918_v1, %v1630_v60  ;;  %v1599_v23 = vmul.f32 %v3999_v63, %v1263_v7  ;;  %v1536_v39 = vmul.f32 %v3954_v31, %v1200_v9  ;;  %v1942_v45 = vadd.f32 %v1520_v36, %v1504_v17  ;;  %v1248_v37 = vld [vmem:[%s5113_s4 + $0x2e8] sm:$0xff]  ;;  %v1406_v55 = vld [vmem:[%s5113_s4 + $0x7d8] sm:$0xff] }
 0x46b   : > { %v1931_v5 = vadd.f32 %v1930_v33, %v1583_v3  ;;  %v1909_v24 = vadd.f32 %v1908_v51, %v1709_v32  ;;  %v1678_v27 = vmul.f32 %v3995_v61, %v1342_v10  ;;  %v1694_v47 = vmul.f32 %v3997_v62, %v1358_v8  ;;  %v1311_v32 = vld [vmem:[%s5113_s4 + $0x4e0] sm:$0xff]  ;;  %v1264_v36 = vld [vmem:[%s5113_s4 + $0x368] sm:$0xff]  ;;  %v1201_v8 = vld [vmem:[%s5113_s4 + $0x170] sm:$0xff] }
 0x46c   : > { %v1920_v28 = vadd.f32 %v1919_v12, %v1646_v59  ;;  %v1615_v29 = vmul.f32 %v4001_v0, %v1279_v18  ;;  %v1552_v35 = vmul.f32 %v3963_v38, %v1216_v19  ;;  %v1943_v40 = vadd.f32 %v1942_v45, %v1536_v39  ;;  %v1343_v3 = vld [vmem:[%s5113_s4 + $0x5e0] sm:$0xff]  ;;  %v1296_v39 = vld [vmem:[%s5113_s4 + $0x468] sm:$0xff] }
 0x46d   : > { %v1932_v16 = vadd.f32 %v1931_v5, %v1599_v23  ;;  %v1910_v42 = vadd.f32 %v1909_v24, %v1725_v50  ;;  %v1710_v44 = vmul.f32 %v4023_v13, %v1374_v20  ;;  %v1631_v22 = vmul.f32 %v3966_v41, %v1295_v21  ;;  %v1327_v50 = vld [vmem:[%s5113_s4 + $0x560] sm:$0xff]  ;;  %v1217_v21 = vld [vmem:[%s5113_s4 + $0x1f0] sm:$0xff] }
 0x46e   : > { %v1921_v49 = vadd.f32 %v1920_v28, %v1662_v11  ;;  %v1568_v43 = vmul.f32 %v3974_v46, %v1232_v30  ;;  %v1944_v34 = vadd.f32 %v1943_v40, %v1552_v35  ;;  %v1521_v60 = vmul.f32 %v3949_v26, %v1185_v6  ;;  %v1359_v33 = vld [vmem:[%s5113_s4 + $0x660] sm:$0xff]  ;;  %v1233_v24 = vld [vmem:[%s5113_s4 + $0x270] sm:$0xff]  ;;  %v1312_v35 = vld [vmem:[%s5113_s4 + $0x4e8] sm:$0xff] }
 0x46f   : > { %v1933_v58 = vadd.f32 %v1932_v16, %v1615_v29  ;;  %v1911_v1 = vadd.f32 %v1910_v42, %v1741_v54  ;;  %v1726_v7 = vmul.f32 %v4025_v14, %v1390_v57  ;;  %v1647_v10 = vmul.f32 %v3978_v52, %v1311_v32  ;;  %v1280_v54 = vld [vmem:[%s5113_s4 + $0x3e8] sm:$0xff]  ;;  %v1375_v23 = vld [vmem:[%s5113_s4 + $0x6e0] sm:$0xff]  ;;  %v1186_v32 = vld [vmem:[%s5113_s4 + $0xf8] sm:$0xff] }
 0x470   : > { %v1922_v9 = vadd.f32 %v1921_v49, %v1678_v27  ;;  %v1584_v51 = vmul.f32 %v3980_v53, %v1248_v37  ;;  %v1945_v59 = vadd.f32 %v1944_v34, %v1568_v43  ;;  %v1505_v11 = vmul.f32 %v3947_v25, %v1169_v48  ;;  %v1391_v29 = vld [vmem:[%s5113_s4 + $0x760] sm:$0xff]  ;;  %v1249_v42 = vld [vmem:[%s5113_s4 + $0x2f0] sm:$0xff]  ;;  %v1328_v43 = vld [vmem:[%s5113_s4 + $0x568] sm:$0xff] }
 0x471   : > { %v1934_v17 = vadd.f32 %v1933_v58, %v1631_v22  ;;  %2007 = vadd.xlane.f32.xlu1 %v1911_v1  ;;  %v1742_v12 = vmul.f32 %v4027_v15, %v1406_v55  ;;  %v1663_v19 = vmul.f32 %v3988_v56, %v1327_v50  ;;  %v1600_v20 = vmul.f32 %v3999_v63, %v1264_v36  ;;  %v1407_v37 = vld [vmem:[%s5113_s4 + $0x7e0] sm:$0xff]  ;;  %v1170_v58 = vld [vmem:[%s5113_s4 + $0x78] sm:$0xff] }
 0x472   : > { %v1923_v18 = vadd.f32 %v1922_v9, %v1694_v47  ;;  %v1946_v45 = vadd.f32 %v1945_v59, %v1584_v51  ;;  %v1537_v27 = vmul.f32 %v3954_v31, %v1201_v8  ;;  %v1957_v47 = vadd.f32 %v1521_v60, %v1505_v11  ;;  %v1265_v60 = vld [vmem:[%s5113_s4 + $0x370] sm:$0xff] }
 0x473   : > { %v1935_v5 = vadd.f32 %v1934_v17, %v1647_v10  ;;  %v1679_v30 = vmul.f32 %v3995_v61, %v1343_v3  ;;  %v1695_v6 = vmul.f32 %v3997_v62, %v1359_v33  ;;  %v1616_v57 = vmul.f32 %v4001_v0, %v1280_v54  ;;  %v1344_v54 = vld [vmem:[%s5113_s4 + $0x5e8] sm:$0xff]  ;;  %v1281_v59 = vld [vmem:[%s5113_s4 + $0x3f0] sm:$0xff] }
 0x474   : > { %v1924_v28 = vadd.f32 %v1923_v18, %v1710_v44  ;;  %v1947_v40 = vadd.f32 %v1946_v45, %v1600_v20  ;;  %v1553_v44 = vmul.f32 %v3963_v38, %v1217_v21  ;;  %v1958_v49 = vadd.f32 %v1957_v47, %v1537_v27  ;;  %v1297_v45 = vld [vmem:[%s5113_s4 + $0x470] sm:$0xff] }
 0x475   : > { %v1936_v16 = vadd.f32 %v1935_v5, %v1663_v19  ;;  %v1711_v48 = vmul.f32 %v4023_v13, %v1375_v23  ;;  %v1632_v55 = vmul.f32 %v3966_v41, %v1296_v39  ;;  %v1569_v50 = vmul.f32 %v3974_v46, %v1233_v24  ;;  %v1360_v5 = vld [vmem:[%s5113_s4 + $0x668] sm:$0xff]  ;;  %v1234_v24 = vld [vmem:[%s5113_s4 + $0x278] sm:$0xff] }
 0x476   : > { %v1925_v22 = vadd.f32 %v1924_v28, %v1726_v7  ;;  %v1948_v34 = vadd.f32 %v1947_v40, %v1616_v57  ;;  %v1959_v1 = vadd.f32 %v1958_v49, %v1553_v44  ;;  %v1202_v7 = vld [vmem:[%s5113_s4 + $0x178] sm:$0xff]  ;;  %v1522_v9 = vmul.f32 %v3949_v26, %v1186_v32  ;;  %v1313_v32 = vld [vmem:[%s5113_s4 + $0x4f0] sm:$0xff] }
 0x477   : > { %v1937_v36 = vadd.f32 %v1936_v16, %v1679_v30  ;;  %v1727_v8 = vmul.f32 %v4025_v14, %v1391_v29  ;;  %v1648_v3 = vmul.f32 %v3978_v52, %v1312_v35  ;;  %v1585_v33 = vmul.f32 %v3980_v53, %v1249_v42  ;;  %v1218_v26 = vld [vmem:[%s5113_s4 + $0x1f8] sm:$0xff] }
 0x478   : > { %v1926_v10 = vadd.f32 %v1925_v22, %v1742_v12  ;;  %v1949_v51 = vadd.f32 %v1948_v34, %v1632_v55  ;;  %v1960_v11 = vadd.f32 %v1959_v1, %v1569_v50  ;;  %v1506_v12 = vmul.f32 %v3947_v25, %v1170_v58  ;;  %v1392_v22 = vld [vmem:[%s5113_s4 + $0x768] sm:$0xff] }
 0x479   : > { %v1938_v17 = vadd.f32 %v1937_v36, %v1695_v6  ;;  %v1743_v18 = vmul.f32 %v4027_v15, %v1407_v37  ;;  %v1664_v19 = vmul.f32 %v3988_v56, %v1328_v43  ;;  %v1601_v20 = vmul.f32 %v3999_v63, %v1265_v60  ;;  %v1376_v6 = vld [vmem:[%s5113_s4 + $0x6e8] sm:$0xff]  ;;  %v1345_v60 = vld [vmem:[%s5113_s4 + $0x5f0] sm:$0xff] }
 0x47a   : > { %2009 = vadd.xlane.f32.xlu0 %v1926_v10  ;;  %v1538_v21 = vmul.f32 %v3954_v31, %v1202_v7  ;;  %v1950_v39 = vadd.f32 %v1949_v51, %v1648_v3  ;;  %v1961_v25 = vadd.f32 %v1960_v11, %v1585_v33  ;;  %v1972_v27 = vadd.f32 %v1522_v9, %v1506_v12  ;;  %v1408_v43 = vld [vmem:[%s5113_s4 + $0x7e8] sm:$0xff]  ;;  %v1282_v3 = vld [vmem:[%s5113_s4 + $0x3f8] sm:$0xff] }
 0x47b   : > { %v1939_v23 = vadd.f32 %v1938_v17, %v1711_v48  ;;  %v1680_v47 = vmul.f32 %v3995_v61, %v1344_v54  ;;  %v1617_v31 = vmul.f32 %v4001_v0, %v1281_v59  ;;  %v1554_v28 = vmul.f32 %v3963_v38, %v1218_v26  ;;  %v1250_v38 = vld [vmem:[%s5113_s4 + $0x2f8] sm:$0xff]  ;;  %v1329_v48 = vld [vmem:[%s5113_s4 + $0x570] sm:$0xff] }
 0x47c   : > { %v1951_v57 = vadd.f32 %v1950_v39, %v1664_v19  ;;  %v1962_v29 = vadd.f32 %v1961_v25, %v1601_v20  ;;  %v1973_v16 = vadd.f32 %v1972_v27, %v1538_v21  ;;  %v2911_v35 = vmov 0   ;;  %v1361_v17 = vld [vmem:[%s5113_s4 + $0x670] sm:$0xff]  ;;  %v1298_v26 = vld [vmem:[%s5113_s4 + $0x478] sm:$0xff] }
 0x47d   : > { %v1940_v30 = vadd.f32 %v1939_v23, %v1727_v8  ;;  %2840 = vset.pattern.permute.xlu0 %v2911_v35  ;;  %v1696_v40 = vmul.f32 %v3997_v62, %v1360_v5  ;;  %v1633_v42 = vmul.f32 %v3966_v41, %v1297_v45  ;;  %v1570_v44 = vmul.f32 %v3974_v46, %v1234_v24  ;;  %v1266_v46 = vld [vmem:[%s5113_s4 + $0x378] sm:$0xff]  ;;  %v1377_v21 = vld [vmem:[%s5113_s4 + $0x6f0] sm:$0xff] }
 0x47e   : > { %2839 = vset.pattern.permute.xlu1 %v2911_v35  ;;  %v1952_v37 = vadd.f32 %v1951_v57, %v1680_v47  ;;  %v1963_v55 = vadd.f32 %v1962_v29, %v1617_v31  ;;  %v1974_v50 = vadd.f32 %v1973_v16, %v1554_v28  ;;  %v1712_v58 = vmul.f32 %v4023_v13, %v1376_v6  ;;  %v1314_v23 = vld [vmem:[%s5113_s4 + $0x4f8] sm:$0xff] }
 0x47f   : > { %v1941_v49 = vadd.f32 %v1940_v30, %v1743_v18  ;;  %v1649_v36 = vmul.f32 %v3978_v52, %v1313_v32  ;;  %v1586_v7 = vmul.f32 %v3980_v53, %v1250_v38  ;;  %v1728_v10 = vmul.f32 %v4025_v14, %v1392_v22  ;;  %v1330_v24 = vld [vmem:[%s5113_s4 + $0x578] sm:$0xff]  ;;  %v2027_v30 = vpop.permute.xlu1 %2026 }
 0x480   : > { %v1953_v34 = vadd.f32 %v1952_v37, %v1696_v40  ;;  %v1964_v1 = vadd.f32 %v1963_v55, %v1633_v42  ;;  %v1975_v9 = vadd.f32 %v1974_v50, %v1570_v44  ;;  %v1665_v8 = vmul.f32 %v3988_v56, %v1329_v48  ;;  %v1346_v6 = vld [vmem:[%s5113_s4 + $0x5f8] sm:$0xff] }
 0x481   : > { %2011 = vadd.xlane.f32.xlu1 %v1941_v49  ;;  %v1602_v51 = vmul.f32 %v3999_v63, %v1266_v46  ;;  %v1744_v53 = vmul.f32 %v4027_v15, %v1408_v43  ;;  %v1681_v11 = vmul.f32 %v3995_v61, %v1345_v60  ;;  %v1618_v19 = vmul.f32 %v4001_v0, %v1282_v3  ;;  %v1393_v0 = vld [vmem:[%s5113_s4 + $0x770] sm:$0xff]  ;;  %v1378_v44 = vld [vmem:[%s5113_s4 + $0x6f8] sm:$0xff]  ;;  %v2031_v60 = vpop.permute.xlu0 %2030 }
 0x482   : > { %v1954_v33 = vadd.f32 %v1953_v34, %v1712_v58  ;;  %v1965_v54 = vadd.f32 %v1964_v1, %v1649_v36  ;;  %v1976_v59 = vadd.f32 %v1975_v9, %v1586_v7  ;;  %v1697_v63 = vmul.f32 %v3997_v62, %v1361_v17  ;;  %v1394_v48 = vld [vmem:[%s5113_s4 + $0x778] sm:$0xff] }
 0x483   : > { %v1634_v45 = vmul.f32 %v3966_v41, %v1298_v26  ;;  %v1713_v27 = vmul.f32 %v4023_v13, %v1377_v21  ;;  %v1650_v31 = vmul.f32 %v3978_v52, %v1314_v23  ;;  %v1409_v41 = vld [vmem:[%s5113_s4 + $0x7f0] sm:$0xff]  ;;  %v1729_v57 = vmul.f32 %v4025_v14, %v1393_v0  ;;  %v1362_v52 = vld [vmem:[%s5113_s4 + $0x678] sm:$0xff] }
 0x484   : > { %v1955_v12 = vadd.f32 %v1954_v33, %v1728_v10  ;;  %v1966_v18 = vadd.f32 %v1965_v54, %v1665_v8  ;;  %v1977_v20 = vadd.f32 %v1976_v59, %v1602_v51  ;;  %v1666_v29 = vmul.f32 %v3988_v56, %v1330_v24  ;;  %v2035_v56 = vpop.permute.xlu1 %2034 }
 0x485   : > { %v1745_v35 = vmul.f32 %v4027_v15, %v1409_v41  ;;  %v1682_v42 = vmul.f32 %v3995_v61, %v1346_v6  ;;  %v1698_v22 = vmul.f32 %v3997_v62, %v1362_v52  ;;  %v1714_v55 = vmul.f32 %v4023_v13, %v1378_v44  ;;  %v1410_v61 = vld [vmem:[%s5113_s4 + $0x7f8] sm:$0xff]  ;;  %v2047_v7 = vpop.permute.xlu0 %2046  ;;  %v2845_v13 = vld [vmem:[%s5114_s5] ss:$0 sm:$0xff] }
 0x486   : > { %v1956_v5 = vadd.f32 %v1955_v12, %v1744_v53  ;;  %v1967_v39 = vadd.f32 %v1966_v18, %v1681_v11  ;;  %v1978_v25 = vadd.f32 %v1977_v20, %v1618_v19  ;;  %v1730_v58 = vmul.f32 %v4025_v14, %v1394_v48 }
 0x487   : > { %v1746_v46 = vmul.f32 %v4027_v15, %v1410_v61 }
 0x488   : > { %2013 = vadd.xlane.f32.xlu0 %v1956_v5  ;;  %v1968_v47 = vadd.f32 %v1967_v39, %v1697_v63  ;;  %v1979_v28 = vadd.f32 %v1978_v25, %v1634_v45  ;;  %v2039_v43 = vpop.permute.xlu1 %2038 }
 0x489   : > { %v2055_v10 = vpop.permute.xlu0 %2054 }
 0x48a   : > { %v1969_v32 = vadd.f32 %v1968_v47, %v1713_v27  ;;  %v1980_v16 = vadd.f32 %v1979_v28, %v1650_v31 }
 0x48c   : > { %v1970_v40 = vadd.f32 %v1969_v32, %v1729_v57  ;;  %v1981_v38 = vadd.f32 %v1980_v16, %v1666_v29  ;;  %v2043_v1 = vpop.permute.xlu1 %2042 }
 0x48d   : > { %v2063_v3 = vpop.permute.xlu0 %2062 }
 0x48e   : > { %v1971_v49 = vadd.f32 %v1970_v40, %v1745_v35  ;;  %v1982_v37 = vadd.f32 %v1981_v38, %v1682_v42 }
 0x490   : > { %2015 = vadd.xlane.f32.xlu1 %v1971_v49  ;;  %v1983_v50 = vadd.f32 %v1982_v37, %v1698_v22  ;;  %v2051_v9 = vpop.permute.xlu1 %2050  ;;  %v5028_v49 = vand.u32 127, %v1061_v2 }
 0x491   : > { %v2071_v33 = vpop.permute.xlu0 %2070 }
 0x492   : > { %v1984_v36 = vadd.f32 %v1983_v50, %v1714_v55  ;;  %v2197_v55 = vadd.s32 4294967280, %v5028_v49  ;;  %v2204_v50 = vadd.s32 4294967272, %v5028_v49  ;;  %v2211_v2 = vadd.s32 4294967264, %v5028_v49 }
 0x494   : > { %v1985_v62 = vadd.f32 %v1984_v36, %v1730_v58  ;;  %v2059_v8 = vpop.permute.xlu1 %2058  ;;  %v2188_v58 = vsub.s32 %v5028_v49, %v3940_v4 }
 0x495   : > { %v2079_v17 = vpop.permute.xlu0 %2078 }
 0x496   : > { %v1986_v34 = vadd.f32 %v1985_v62, %v1746_v46  ;;  %v2200_v46 = vsub.s32 %v2197_v55, %v3940_v4  ;;  %v2207_v62 = vsub.s32 %v2204_v50, %v3940_v4 }
 0x498   : > { %2017 = vadd.xlane.f32.xlu0 %v1986_v34  ;;  %v2067_v14 = vpop.permute.xlu1 %2066 }
 0x49c   : > { %v2075_v15 = vpop.permute.xlu1 %2074 }
 0x4a1   : > { %2082 = vbcast.lane.b32.xlu1 %v2845_v13, 368 }
 0x4ae   : > { %2086 = vbcast.lane.b32.xlu0 %v2845_v13, 376  ;;  %v2225_v13 = vadd.s32 4294967248, %v5028_v49 }
 0x4b8   : > { %v1990_v54 = vpop.xlane.xlu1 %1989 }
 0x4b9   : > { %v2105_v51 = vadd.f32 %v2031_v60, %v1990_v54 }
 0x4bb   : > { %2140 = vperm.xlu0 %2840, %v2105_v51   ;;  %v1988_v59 = vpop.xlane.xlu0 %1987  ;;  %v2228_v51 = vsub.s32 %v2225_v13, %v3940_v4 }
 0x4bc   : > { %v2104_v53 = vadd.f32 %v2027_v30, %v1988_v59  ;;  %v2239_v59 = vadd.s32 4294967232, %v5028_v49 }
 0x4be   : > { %2137 = vperm.xlu1 %2839, %v2104_v53  }
 0x4c1   : > { %v1992_v11 = vpop.xlane.xlu1 %1991 }
 0x4c2   : > { %v2106_v26 = vadd.f32 %v2035_v56, %v1992_v11  ;;  %v2190_v56 = vadd.s32 4294967288, %v5028_v49 }
 0x4c4   : > { %2143 = vperm.xlu1 %2839, %v2106_v26   ;;  %v2193_v36 = vsub.s32 %v2190_v56, %v3940_v4 }
 0x4c8   : > { %v1994_v12 = vpop.xlane.xlu0 %1993 }
 0x4c9   : > { %v2107_v18 = vadd.f32 %v2039_v43, %v1994_v12  ;;  %v2218_v43 = vadd.s32 4294967256, %v5028_v49  ;;  %v2246_v12 = vadd.s32 4294967224, %v5028_v49 }
 0x4cb   : > { %2146 = vperm.xlu1 %2839, %v2107_v18  }
 0x4d0   : > { %v1996_v19 = vpop.xlane.xlu1 %1995 }
 0x4d1   : > { %v2108_v20 = vadd.f32 %v2043_v1, %v1996_v19 }
 0x4d3   : > { %2149 = vperm.xlu0 %2840, %v2108_v20  }
 0x4d9   : > { %v1998_v21 = vpop.xlane.xlu0 %1997 }
 0x4da   : > { %v2109_v63 = vadd.f32 %v2047_v7, %v1998_v21  ;;  %v2242_v21 = vsub.s32 %v2239_v59, %v3940_v4 }
 0x4dc   : > { %2152 = vperm.xlu1 %2839, %v2109_v63   ;;  %v2253_v63 = vadd.s32 4294967216, %v5028_v49 }
 0x4df   : > { %v2000_v23 = vpop.xlane.xlu1 %1999 }
 0x4e0   : > { %v2110_v5 = vadd.f32 %v2051_v9, %v2000_v23  ;;  %v2214_v9 = vsub.s32 %v2211_v2, %v3940_v4 }
 0x4e2   : > { %2155 = vperm.xlu0 %2840, %v2110_v5  }
 0x4e8   : > { %v2002_v39 = vpop.xlane.xlu0 %2001 }
 0x4e9   : > { %v2111_v45 = vadd.f32 %v2055_v10, %v2002_v39  ;;  %v2249_v39 = vsub.s32 %v2246_v12, %v3940_v4 }
 0x4eb   : > { %2158 = vperm.xlu1 %2839, %v2111_v45  }
 0x4ee   : > { %v2004_v25 = vpop.xlane.xlu1 %2003 }
 0x4ef   : > { %v2112_v0 = vadd.f32 %v2059_v8, %v2004_v25  ;;  %v2260_v25 = vadd.s32 4294967208, %v5028_v49 }
 0x4f1   : > { %2161 = vperm.xlu0 %2840, %v2112_v0  }
 0x4f7   : > { %v2006_v24 = vpop.xlane.xlu0 %2005 }
 0x4f8   : > { %v2113_v27 = vadd.f32 %v2063_v3, %v2006_v24  ;;  %v2221_v3 = vsub.s32 %v2218_v43, %v3940_v4 }
 0x4fa   : > { %2164 = vperm.xlu1 %2839, %v2113_v27   ;;  %v2256_v27 = vsub.s32 %v2253_v63, %v3940_v4 }
 0x4fe   : > { %v2008_v47 = vpop.xlane.xlu1 %2007 }
 0x4ff   : > { %v2114_v31 = vadd.f32 %v2067_v14, %v2008_v47  ;;  %v2232_v14 = vadd.s32 4294967240, %v5028_v49 }
 0x501   : > { %2167 = vperm.xlu0 %2840, %v2114_v31   ;;  %v2235_v26 = vsub.s32 %v2232_v14, %v3940_v4  ;;  %v2267_v31 = vadd.s32 4294967200, %v5028_v49 }
 0x507   : > { %v2010_v28 = vpop.xlane.xlu0 %2009 }
 0x508   : > { %v2115_v30 = vadd.f32 %v2071_v33, %v2010_v28 }
 0x50a   : > { %2170 = vperm.xlu1 %2839, %v2115_v30  }
 0x50e   : > { %v2012_v41 = vpop.xlane.xlu1 %2011 }
 0x50f   : > { %v2116_v6 = vadd.f32 %v2075_v15, %v2012_v41  ;;  %v2263_v41 = vsub.s32 %v2260_v25, %v3940_v4 }
 0x511   : > { %2173 = vperm.xlu0 %2840, %v2116_v6   ;;  %v2274_v6 = vadd.s32 4294967192, %v5028_v49 }
 0x515   : > { %v2014_v57 = vpop.xlane.xlu0 %2013 }
 0x516   : > { %v2117_v32 = vadd.f32 %v2079_v17, %v2014_v57  ;;  %v2281_v57 = vadd.s32 4294967184, %v5028_v49 }
 0x518   : > { %2176 = vperm.xlu1 %2839, %v2117_v32  }
 0x51d   : > { %v2016_v29 = vpop.xlane.xlu1 %2015 }
 0x521   : > { %v2083_v16 = vpop.permute.xlu1 %2082 }
 0x522   : > { %v2118_v52 = vadd.f32 %v2083_v16, %v2016_v29 }
 0x524   : > { %2179 = vperm.xlu0 %2840, %v2118_v52   ;;  %v2270_v52 = vsub.s32 %v2267_v31, %v3940_v4 }
 0x525   : > { %v2018_v35 = vpop.xlane.xlu0 %2017 }
 0x529   : > { %v2087_v40 = vpop.permute.xlu0 %2086 }
 0x52a   : > { %v2119_v42 = vadd.f32 %v2087_v40, %v2018_v35 }
 0x52c   : > { %2182 = vperm.xlu1 %2839, %v2119_v42   ;;  %v2277_v42 = vsub.s32 %v2274_v6, %v3940_v4 }
 0x53a   : > { %v2141_v22 = vpop.permute.xlu0 %2140 }
 0x53b   : > { %v2194_v1 = vrot.slane %v2141_v22, %v2193_v36  ;;  %v2288_v22 = vadd.s32 4294967176, %v5028_v49 }
 0x53d   : > { %v2138_v38 = vpop.permute.xlu1 %2137 }
 0x53e   : > { %v2189_v60 = vrot.slane %v2138_v38, %v2188_v58  ;;  %v2291_v58 = vsub.s32 %v2288_v22, %v3940_v4 }
 0x540   : > { %v2196_v33 = vsel %vm2195_vm0, %v2194_v1, %v2189_v60 }
 0x543   : > { %v2144_v44 = vpop.permute.xlu1 %2143 }
 0x544   : > { %v2201_v7 = vrot.slane %v2144_v44, %v2200_v46  ;;  %v2284_v44 = vsub.s32 %v2281_v57, %v3940_v4 }
 0x546   : > { %v2203_v17 = vsel %vm2202_vm1, %v2201_v7, %v2196_v33 }
 0x54a   : > { %v2147_v37 = vpop.permute.xlu1 %2146 }
 0x54b   : > { %v2208_v8 = vrot.slane %v2147_v37, %v2207_v62 }
 0x54d   : > { %v2210_v53 = vsel %vm2209_vm2, %v2208_v8, %v2203_v17 }
 0x552   : > { %v2150_v48 = vpop.permute.xlu0 %2149 }
 0x553   : > { %v2215_v54 = vrot.slane %v2150_v48, %v2214_v9 }
 0x555   : > { %v2217_v19 = vsel %vm2216_vm3, %v2215_v54, %v2210_v53 }
 0x55b   : > { %v2153_v61 = vpop.permute.xlu1 %2152 }
 0x55c   : > { %v2222_v11 = vrot.slane %v2153_v61, %v2221_v3 }
 0x55e   : > { %v2224_v23 = vsel %vm2223_vm4, %v2222_v11, %v2217_v19 }
 0x561   : > { %v2156_v34 = vpop.permute.xlu0 %2155 }
 0x562   : > { %v2229_v20 = vrot.slane %v2156_v34, %v2228_v51 }
 0x564   : > { %v2231_v0 = vsel %vm2230_vm5, %v2229_v20, %v2224_v23 }
 0x56a   : > { %v2159_v10 = vpop.permute.xlu1 %2158 }
 0x56b   : > { %v2236_v5 = vrot.slane %v2159_v10, %v2235_v26 }
 0x56d   : > { %v2238_v28 = vsel %vm2237_vm6, %v2236_v5, %v2231_v0 }
 0x570   : > { %v2162_v15 = vpop.permute.xlu0 %2161 }
 0x571   : > { %v2243_v24 = vrot.slane %v2162_v15, %v2242_v21 }
 0x573   : > { %v2245_v29 = vsel %vm2244_vm7, %v2243_v24, %v2238_v28 }
 0x579   : > { %v2165_v18 = vpop.permute.xlu1 %2164 }
 0x57a   : > { %v2250_v30 = vrot.slane %v2165_v18, %v2249_v39 }
 0x57c   : > { %v2252_v35 = vsel %vm2251_vm8, %v2250_v30, %v2245_v29 }
 0x580   : > { %v2168_v45 = vpop.permute.xlu0 %2167 }
 0x581   : > { %v2257_v16 = vrot.slane %v2168_v45, %v2256_v27 }
 0x583   : > { %v2259_v56 = vsel %vm2258_vm9, %v2257_v16, %v2252_v35 }
 0x589   : > { %v2171_v47 = vpop.permute.xlu1 %2170 }
 0x58a   : > { %v2264_v40 = vrot.slane %v2171_v47, %v2263_v41 }
 0x58c   : > { %v2266_v55 = vsel %vm2265_vm10, %v2264_v40, %v2259_v56 }
 0x590   : > { %v2174_v32 = vpop.permute.xlu0 %2173 }
 0x591   : > { %v2271_v48 = vrot.slane %v2174_v32, %v2270_v52 }
 0x593   : > { %v2273_v36 = vsel %vm2272_vm11, %v2271_v48, %v2266_v55 }
 0x597   : > { %v2177_v38 = vpop.permute.xlu1 %2176 }
 0x598   : > { %v2278_v50 = vrot.slane %v2177_v38, %v2277_v42 }
 0x59a   : > { %v2280_v46 = vsel %vm2279_vm12, %v2278_v50, %v2273_v36 }
 0x5a3   : > { %v2180_v37 = vpop.permute.xlu0 %2179 }
 0x5a4   : > { %v2285_v61 = vrot.slane %v2180_v37, %v2284_v44 }
 0x5a6   : > { %v2287_v49 = vsel %vm2286_vm13, %v2285_v61, %v2280_v46 }
 0x5ab   : > { %v2183_v2 = vpop.permute.xlu1 %2182 }
 0x5ac   : > { %v2292_v62 = vrot.slane %v2183_v2, %v2291_v58 }
 0x5ae   : > { %v2294_v4 = vsel %vm2293_vm14, %v2292_v62, %v2287_v49 }
 0x5af   : > { %2296 = vst [vmem:[%s243_s12] sm:$0x1] %v2294_v4 }
 0x5b0   : > { %2859 = shalt.err (!%p2856_p3)
}
 0x5b1   : > { %s2860_s28 = scalar_lea.hbm %s5067_s17, 16  ;;  %s2864_s9 = scalar_lea.hbm %s5115_s6, 32 }
 0x5b2   : > { %p2861_p4 = scmp.ne.s32.totalorder %s5067_s17, %s2860_s28  ;;  %p2865_p9 = scmp.lt.u32.totalorder %s5067_s17, %s5115_s6 }
 0x5b3   : > { %p2866_p10 = scmp.lt.u32.totalorder %s2864_s9, %s2860_s28  ;;  %p2868_p12 = scmp.lt.u32.totalorder %s2860_s28, %s5067_s17 }
 0x5b4   : > { %p2862_p7 = pnand %p2861_p4, %p2986_p5 }
 0x5b5   : > { %p2867_p11 = por %p2866_p10, %p2865_p9 }
 0x5b6   : > { %p2863_p8 = pneg %p2862_p7 }
 0x5b7   : > { %p2869_p13 = por %p2868_p12, %p2867_p11 }
 0x5b9   : > { %p2870_p0 = pnand %p2869_p13, %p2863_p8 }
 0x5bb   : > { %2873 = shalt.err (!%p2870_p0)
}
 0x5bc   : > { %2798 = dma.vmem_to_hbm [thread:$0]  (%p2986_p5), %s5069_s13, 16, %s5067_s17, %s2298_s18  }
 0x5bd PF: > { %p2804_p1 = scmp.ge.s32.totalorder %s2908_s24, 2  ;;  %s2322_s12 = sand.u32 1, %s2896_s21  }
 0x5be   : > { %s2323_s15 = scalar_lea.sflag [#allocation3], %s2322_s12 }
 0x5bf   : > { %p2801_p2 = pnand %p2804_p1, %p2990_p6 }
 0x5c1   : > { %2891 = dma.done.wait (!%p2801_p2), %s2323_s15, 16  }
 0x5c2   : > { %2893 = vsyncadd (!%p2801_p2), %s2323_s15, 4294967280  ;;  %p16_p3 = scmp.ge.s32.totalorder %s2973_s27, 4   ;;  %s5118_s21 = smov %s2900_s22 }
 0x5c3   : > { %s5119_s22 = smov %s2904_s23  ;;  %s5120_s23 = smov %s2984_s30 }
 0x5c4   : > { %s5121_s24 = smov %s2973_s27  ;;  %18 = sbr.rel (!%p16_p3) target bundleno = 3 (0x3), region = 79 }
 0x5cb   :  { %2327 = vsyncpa [#allocation3], 1 }
 0x5cc   :  { %2329 = vsyncpa [#allocation3 + $0x1], 1 }

</bundles_post_ra>
